<compile_context>
chip_gen: v5e
topology: v5e:2x2
jax: 0.10.0
libtpu: 0.0.40
codegen_flags: <defaults>
</compile_context>

<pallas_src>
import jax
import jax.numpy as jnp
import numpy as np
from jax.experimental import pallas as pl
from jax.experimental.pallas import tpu as pltpu


# ----------------------------------------------------------------------------
# Fused kernel: one image per grid step, everything VMEM-resident.
# ----------------------------------------------------------------------------
def _lenet5_kernel(x4_ref, s1_ref, b1_ref, u2_ref, b2_ref,
                   wf1_ref, bf1_ref, wf2_ref, bf2_ref, wf3_ref, bf3_ref,
                   o_ref):
    f32 = jnp.float32
    bias1 = b1_ref[...]                                   # (1, 256)
    bias2 = b2_ref[...]                                   # (1, 256)

    # ---- conv1 (5x5, pad=2) + tanh --------------------------------------
    # x4_ref holds the 32x32 zero-padded image with rows pre-split by
    # (row mod 4): x4[r, i, :] = padded_row[4*i + r].  Output rows are
    # produced in 4 blocks of 7: block s holds rows oy = 4t + s, so every
    # (block, tap) left operand is a contiguous 7-row slice.
    # Columns = (x-parity, pooled-x(16, 14 real), out-ch(8, 6 real)) = 256.
    a1 = []
    for s in range(4):
        acc = bias1
        for ky in range(5):
            src = (s + ky) % 4                            # input row class
            off = (s + ky) // 4                           # start row in class
            acc = acc + jnp.dot(x4_ref[src, pl.ds(off, 7), :], s1_ref[ky],
                                preferred_element_type=f32)
        a1.append(jnp.tanh(acc))                          # (7, 256)

    # ---- pool1 (2x2 avg, pure VPU) ---------------------------------------
    # y-pairs are (block0+block1) and (block2+block3); x-pairs are the two
    # 128-aligned column halves (even-x half, odd-x half).
    ys_e = a1[0] + a1[1]                                  # pooled rows 0,2,..,12
    ys_o = a1[2] + a1[3]                                  # pooled rows 1,3,..,13
    p1e = 0.25 * (ys_e[:, 0:128] + ys_e[:, 128:256])      # (7, 128) = (py,(px,c8))
    p1o = 0.25 * (ys_o[:, 0:128] + ys_o[:, 128:256])      # (7, 128)

    # ---- conv2 (5x5, valid) + tanh ---------------------------------------
    # Even / odd output rows computed separately so pool2's y-reduction is a
    # plain add.  Columns = (x-parity, pooled-x(8, 5 real), out-ch 16) = 256.
    acc_e = bias2
    acc_o = bias2
    for ky in range(5):
        u = u2_ref[ky]                                    # (128, 256)
        q, r = divmod(ky, 2)
        if r == 0:
            acc_e = acc_e + jnp.dot(p1e[q:q + 5, :], u, preferred_element_type=f32)
            acc_o = acc_o + jnp.dot(p1o[q:q + 5, :], u, preferred_element_type=f32)
        else:
            acc_e = acc_e + jnp.dot(p1o[q:q + 5, :], u, preferred_element_type=f32)
            acc_o = acc_o + jnp.dot(p1e[q + 1:q + 6, :], u, preferred_element_type=f32)
    a2e = jnp.tanh(acc_e)                                 # rows oy = 0,2,4,6,8
    a2o = jnp.tanh(acc_o)                                 # rows oy = 1,3,5,7,9

    # ---- pool2 (2x2 avg, pure VPU) ---------------------------------------
    ys2 = a2e + a2o
    p2 = 0.25 * (ys2[:, 0:128] + ys2[:, 128:256])         # (5, 128) = (py,(px,c16))

    # ---- fc1 + tanh (torch NCHW flatten folded into wf1), fc2 + tanh, fc3 -
    h = bf1_ref[...]
    for py in range(5):
        h = h + jnp.dot(p2[py:py + 1, :], wf1_ref[py], preferred_element_type=f32)
    h = jnp.tanh(h)                                       # (1, 128)
    h = jnp.tanh(jnp.dot(h, wf2_ref[...], preferred_element_type=f32) + bf2_ref[...])
    out = jnp.dot(h, wf3_ref[...], preferred_element_type=f32) + bf3_ref[...]
    o_ref[...] = out.astype(o_ref.dtype)                  # lane-dense (1, 128)


# ----------------------------------------------------------------------------
# One-time parameter preprocessing (hoisted out of the forward pass).
# ----------------------------------------------------------------------------
def prepare_params(params):
    w1 = np.asarray(params["conv1_w"], np.float32)        # (6,1,5,5)
    b1 = np.asarray(params["conv1_b"], np.float32)
    w2 = np.asarray(params["conv2_w"], np.float32)        # (16,6,5,5)
    b2 = np.asarray(params["conv2_b"], np.float32)
    f1w = np.asarray(params["fc1_w"], np.float32)         # (120,400)
    f1b = np.asarray(params["fc1_b"], np.float32)
    f2w = np.asarray(params["fc2_w"], np.float32)         # (84,120)
    f2b = np.asarray(params["fc2_b"], np.float32)
    f3w = np.asarray(params["fc3_w"], np.float32)         # (10,84)
    f3b = np.asarray(params["fc3_b"], np.float32)

    # conv1 as 5 banded matrices: row = padded-input x (32),
    # col = (x-parity, pooled-x 16 (14 real), out-ch 8 (6 real)) = 256.
    s1 = np.zeros((5, 32, 256), np.float32)
    b1t = np.zeros((1, 256), np.float32)
    for ox in range(28):
        px, sx = divmod(ox, 2)
        col = sx * 128 + px * 8
        b1t[0, col:col + 6] = b1
        for ky in range(5):
            for kx in range(5):
                s1[ky, ox + kx, col:col + 6] = w1[:, 0, ky, kx]

    # conv2 as 5 banded matrices: row = (pool1-x 16 (14 real), in-ch 8 (6 real)),
    # col = (x-parity, pooled-x 8 (5 real), out-ch 16) = 256.
    u2 = np.zeros((5, 128, 256), np.float32)
    b2t = np.zeros((1, 256), np.float32)
    for ox in range(10):
        px, sx = divmod(ox, 2)
        col = sx * 128 + px * 16
        b2t[0, col:col + 16] = b2
        for ky in range(5):
            for kx in range(5):
                xin = ox + kx
                for ci in range(6):
                    u2[ky, xin * 8 + ci, col:col + 16] = w2[:, ci, ky, kx]

    # fc1: fold the torch NCHW flatten order (c*25 + y*5 + x) into a per-row
    # weight stack indexed by the kernel's (px, c) column layout; pad 120->128.
    wf1 = np.zeros((5, 128, 128), np.float32)
    for py in range(5):
        for px in range(5):
            for c in range(16):
                wf1[py, px * 16 + c, :120] = f1w[:, c * 25 + py * 5 + px]
    bf1 = np.zeros((1, 128), np.float32); bf1[0, :120] = f1b
    wf2 = np.zeros((128, 128), np.float32); wf2[:120, :84] = f2w.T
    bf2 = np.zeros((1, 128), np.float32); bf2[0, :84] = f2b
    wf3 = np.zeros((128, 128), np.float32); wf3[:84, :10] = f3w.T
    bf3 = np.zeros((1, 128), np.float32); bf3[0, :10] = f3b

    return {k: jnp.asarray(v) for k, v in dict(
        s1=s1, b1t=b1t, u2=u2, b2t=b2t, wf1=wf1, bf1=bf1,
        wf2=wf2, bf2=bf2, wf3=wf3, bf3=bf3).items()}


# ----------------------------------------------------------------------------
# Forward pass: one fused pallas_call, gridded (parallel) over the batch.
# ----------------------------------------------------------------------------
def lenet5_forward(x, prep):
    """x: (B, 1, 28, 28) float32 -> logits (B, 10)."""
    B = x.shape[0]
    xp = jnp.pad(x[:, 0].astype(jnp.float32), ((0, 0), (2, 2), (2, 2)))  # (B,32,32)
    # Pre-split padded rows by (row mod 4): the kernel then only ever needs
    # contiguous row slices (no strided / gather access in-kernel).
    x4 = jnp.stack([xp[:, r::4, :] for r in range(4)], axis=1)           # (B,4,8,32)

    out = pl.pallas_call(
        _lenet5_kernel,
        out_shape=jax.ShapeDtypeStruct((B, 1, 128), jnp.float32),
        grid=(B,),
        in_specs=[
            pl.BlockSpec((None, 4, 8, 32), lambda i: (i, 0, 0, 0)),   # image
            pl.BlockSpec((5, 32, 256), lambda i: (0, 0, 0)),          # conv1 bands
            pl.BlockSpec((1, 256), lambda i: (0, 0)),                 # conv1 bias
            pl.BlockSpec((5, 128, 256), lambda i: (0, 0, 0)),         # conv2 bands
            pl.BlockSpec((1, 256), lambda i: (0, 0)),                 # conv2 bias
            pl.BlockSpec((5, 128, 128), lambda i: (0, 0, 0)),         # fc1 (perm.)
            pl.BlockSpec((1, 128), lambda i: (0, 0)),                 # fc1 bias
            pl.BlockSpec((128, 128), lambda i: (0, 0)),               # fc2
            pl.BlockSpec((1, 128), lambda i: (0, 0)),                 # fc2 bias
            pl.BlockSpec((128, 128), lambda i: (0, 0)),               # fc3
            pl.BlockSpec((1, 128), lambda i: (0, 0)),                 # fc3 bias
        ],
        out_specs=pl.BlockSpec((None, 1, 128), lambda i: (i, 0, 0)),
        compiler_params=pltpu.CompilerParams(dimension_semantics=("parallel",)),
        cost_estimate=pl.CostEstimate(flops=5_800_000 * B,
                                      transcendentals=10_000 * B,
                                      bytes_accessed=2_000_000 + 4_608 * B),
    )(x4, prep["s1"], prep["b1t"], prep["u2"], prep["b2t"],
      prep["wf1"], prep["bf1"], prep["wf2"], prep["bf2"],
      prep["wf3"], prep["bf3"])
    return out.reshape(B, 128)[:, :10]


# ----------------------------------------------------------------------------
# Deterministic synthetic parameters (PyTorch shapes) and a pure-JAX reference.
# ----------------------------------------------------------------------------
def init_params(key):
    ks = jax.random.split(key, 10)
    def w(k, shape):
        return jax.random.normal(k, shape, jnp.float32) * 0.05
    return {
        "conv1_w": w(ks[0], (6, 1, 5, 5)),   "conv1_b": w(ks[1], (6,)),
        "conv2_w": w(ks[2], (16, 6, 5, 5)),  "conv2_b": w(ks[3], (16,)),
        "fc1_w":   w(ks[4], (120, 400)),     "fc1_b":   w(ks[5], (120,)),
        "fc2_w":   w(ks[6], (84, 120)),      "fc2_b":   w(ks[7], (84,)),
        "fc3_w":   w(ks[8], (10, 84)),       "fc3_b":   w(ks[9], (10,)),
    }


def reference_forward(x, params):
    hi = jax.lax.Precision.HIGHEST
    B = x.shape[0]
    y = jax.lax.conv_general_dilated(
        x, params["conv1_w"], (1, 1), ((2, 2), (2, 2)),
        dimension_numbers=("NCHW", "OIHW", "NCHW"), precision=hi)
    y = jnp.tanh(y + params["conv1_b"][None, :, None, None])
    y = y.reshape(B, 6, 14, 2, 14, 2).mean(axis=(3, 5))
    y = jax.lax.conv_general_dilated(
        y, params["conv2_w"], (1, 1), ((0, 0), (0, 0)),
        dimension_numbers=("NCHW", "OIHW", "NCHW"), precision=hi)
    y = jnp.tanh(y + params["conv2_b"][None, :, None, None])
    y = y.reshape(B, 16, 5, 2, 5, 2).mean(axis=(3, 5))
    y = y.reshape(B, 400)
    y = jnp.tanh(jnp.dot(y, params["fc1_w"].T, precision=hi) + params["fc1_b"])
    y = jnp.tanh(jnp.dot(y, params["fc2_w"].T, precision=hi) + params["fc2_b"])
    return jnp.dot(y, params["fc3_w"].T, precision=hi) + params["fc3_b"]


if __name__ == "__main__":
    key = jax.random.PRNGKey(0)
    kx, kp = jax.random.split(key)
    # LeNet-5's fc1 (400 = 16*5*5) implies a 1x28x28 input; batch=2.
    x = jax.random.normal(kx, (2, 1, 28, 28), jnp.float32)
    params = init_params(kp)
    prep = prepare_params(params)

    out = jax.jit(lenet5_forward)(x, prep)
    out = jax.block_until_ready(out)
    assert out.shape == (2, 10) and out.dtype == jnp.float32

    ref = reference_forward(x, params)
    err = float(jnp.max(jnp.abs(out - ref)))
    assert jnp.allclose(out, ref, atol=5e-4, rtol=1e-3), err
    print("KERNEL_OK")
</pallas_src>

<mosaic_0001>
module attributes {stable_mosaic.version = 11 : i64} {
  func.func @_lenet5_kernel(%arg0: i32, %arg1: memref<1x4x8x32xf32, #tpu.memory_space<vmem>>, %arg2: memref<5x32x256xf32, #tpu.memory_space<vmem>>, %arg3: memref<1x256xf32, #tpu.memory_space<vmem>>, %arg4: memref<5x128x256xf32, #tpu.memory_space<vmem>>, %arg5: memref<1x256xf32, #tpu.memory_space<vmem>>, %arg6: memref<5x128x128xf32, #tpu.memory_space<vmem>>, %arg7: memref<1x128xf32, #tpu.memory_space<vmem>>, %arg8: memref<128x128xf32, #tpu.memory_space<vmem>>, %arg9: memref<1x128xf32, #tpu.memory_space<vmem>>, %arg10: memref<128x128xf32, #tpu.memory_space<vmem>>, %arg11: memref<1x128xf32, #tpu.memory_space<vmem>>, %arg12: memref<1x1x128xf32, #tpu.memory_space<vmem>>) attributes {dimension_semantics = [#tpu.dimension_semantics<parallel>], iteration_bounds = array<i64: 2>, scalar_prefetch = 0 : i64, scratch_operands = 0 : i64, tpu.core_type = #tpu.core_type<tc>, window_params = [{transform_indices = @transform_0, window_bounds = array<i64: 1, 4, 8, 32>}, {pipeline_mode = #tpu.pipeline_mode<synchronous>, transform_indices = @transform_1, window_bounds = array<i64: 5, 32, 256>}, {pipeline_mode = #tpu.pipeline_mode<synchronous>, transform_indices = @transform_2, window_bounds = array<i64: 1, 256>}, {pipeline_mode = #tpu.pipeline_mode<synchronous>, transform_indices = @transform_3, window_bounds = array<i64: 5, 128, 256>}, {pipeline_mode = #tpu.pipeline_mode<synchronous>, transform_indices = @transform_4, window_bounds = array<i64: 1, 256>}, {pipeline_mode = #tpu.pipeline_mode<synchronous>, transform_indices = @transform_5, window_bounds = array<i64: 5, 128, 128>}, {pipeline_mode = #tpu.pipeline_mode<synchronous>, transform_indices = @transform_6, window_bounds = array<i64: 1, 128>}, {pipeline_mode = #tpu.pipeline_mode<synchronous>, transform_indices = @transform_7, window_bounds = array<i64: 128, 128>}, {pipeline_mode = #tpu.pipeline_mode<synchronous>, transform_indices = @transform_8, window_bounds = array<i64: 1, 128>}, {pipeline_mode = #tpu.pipeline_mode<synchronous>, transform_indices = @transform_9, window_bounds = array<i64: 128, 128>}, {pipeline_mode = #tpu.pipeline_mode<synchronous>, transform_indices = @transform_10, window_bounds = array<i64: 1, 128>}, {transform_indices = @transform_11, window_bounds = array<i64: 1, 1, 128>}]} {
    %c0 = arith.constant 0 : index
    %c0_0 = arith.constant 0 : index
    %0 = vector.load %arg3[%c0, %c0_0] : memref<1x256xf32, #tpu.memory_space<vmem>>, vector<1x256xf32>
    %c0_1 = arith.constant 0 : index
    %c0_2 = arith.constant 0 : index
    %1 = vector.load %arg5[%c0_1, %c0_2] : memref<1x256xf32, #tpu.memory_space<vmem>>, vector<1x256xf32>
    %c0_3 = arith.constant 0 : index
    %c0_4 = arith.constant 0 : index
    %c0_5 = arith.constant 0 : index
    %c0_6 = arith.constant 0 : index
    %2 = vector.load %arg1[%c0_3, %c0_4, %c0_5, %c0_6] : memref<1x4x8x32xf32, #tpu.memory_space<vmem>>, vector<1x1x7x32xf32>
    %3 = vector.shape_cast %2 : vector<1x1x7x32xf32> to vector<7x32xf32>
    %c0_7 = arith.constant 0 : index
    %c0_8 = arith.constant 0 : index
    %c0_9 = arith.constant 0 : index
    %4 = vector.load %arg2[%c0_7, %c0_8, %c0_9] : memref<5x32x256xf32, #tpu.memory_space<vmem>>, vector<1x32x256xf32>
    %5 = vector.shape_cast %4 : vector<1x32x256xf32> to vector<32x256xf32>
    %cst = arith.constant dense<0.000000e+00> : vector<7x256xf32>
    %6 = tpu.matmul %3, %5, %cst {dimension_numbers = #tpu.dot_dimension_numbers<[1], [0], [0], [1], [0, 0, 1, 1], [], []>} : vector<7x32xf32>, vector<32x256xf32>, vector<7x256xf32> -> vector<7x256xf32>
    %7 = vector.broadcast %0 : vector<1x256xf32> to vector<7x256xf32>
    %8 = arith.addf %7, %6 : vector<7x256xf32>
    %c0_10 = arith.constant 0 : index
    %c1 = arith.constant 1 : index
    %c0_11 = arith.constant 0 : index
    %c0_12 = arith.constant 0 : index
    %9 = vector.load %arg1[%c0_10, %c1, %c0_11, %c0_12] : memref<1x4x8x32xf32, #tpu.memory_space<vmem>>, vector<1x1x7x32xf32>
    %10 = vector.shape_cast %9 : vector<1x1x7x32xf32> to vector<7x32xf32>
    %c1_13 = arith.constant 1 : index
    %c0_14 = arith.constant 0 : index
    %c0_15 = arith.constant 0 : index
    %11 = vector.load %arg2[%c1_13, %c0_14, %c0_15] : memref<5x32x256xf32, #tpu.memory_space<vmem>>, vector<1x32x256xf32>
    %12 = vector.shape_cast %11 : vector<1x32x256xf32> to vector<32x256xf32>
    %cst_16 = arith.constant dense<0.000000e+00> : vector<7x256xf32>
    %13 = tpu.matmul %10, %12, %cst_16 {dimension_numbers = #tpu.dot_dimension_numbers<[1], [0], [0], [1], [0, 0, 1, 1], [], []>} : vector<7x32xf32>, vector<32x256xf32>, vector<7x256xf32> -> vector<7x256xf32>
    %14 = arith.addf %8, %13 : vector<7x256xf32>
    %c0_17 = arith.constant 0 : index
    %c2 = arith.constant 2 : index
    %c0_18 = arith.constant 0 : index
    %c0_19 = arith.constant 0 : index
    %15 = vector.load %arg1[%c0_17, %c2, %c0_18, %c0_19] : memref<1x4x8x32xf32, #tpu.memory_space<vmem>>, vector<1x1x7x32xf32>
    %16 = vector.shape_cast %15 : vector<1x1x7x32xf32> to vector<7x32xf32>
    %c2_20 = arith.constant 2 : index
    %c0_21 = arith.constant 0 : index
    %c0_22 = arith.constant 0 : index
    %17 = vector.load %arg2[%c2_20, %c0_21, %c0_22] : memref<5x32x256xf32, #tpu.memory_space<vmem>>, vector<1x32x256xf32>
    %18 = vector.shape_cast %17 : vector<1x32x256xf32> to vector<32x256xf32>
    %cst_23 = arith.constant dense<0.000000e+00> : vector<7x256xf32>
    %19 = tpu.matmul %16, %18, %cst_23 {dimension_numbers = #tpu.dot_dimension_numbers<[1], [0], [0], [1], [0, 0, 1, 1], [], []>} : vector<7x32xf32>, vector<32x256xf32>, vector<7x256xf32> -> vector<7x256xf32>
    %20 = arith.addf %14, %19 : vector<7x256xf32>
    %c0_24 = arith.constant 0 : index
    %c3 = arith.constant 3 : index
    %c0_25 = arith.constant 0 : index
    %c0_26 = arith.constant 0 : index
    %21 = vector.load %arg1[%c0_24, %c3, %c0_25, %c0_26] : memref<1x4x8x32xf32, #tpu.memory_space<vmem>>, vector<1x1x7x32xf32>
    %22 = vector.shape_cast %21 : vector<1x1x7x32xf32> to vector<7x32xf32>
    %c3_27 = arith.constant 3 : index
    %c0_28 = arith.constant 0 : index
    %c0_29 = arith.constant 0 : index
    %23 = vector.load %arg2[%c3_27, %c0_28, %c0_29] : memref<5x32x256xf32, #tpu.memory_space<vmem>>, vector<1x32x256xf32>
    %24 = vector.shape_cast %23 : vector<1x32x256xf32> to vector<32x256xf32>
    %cst_30 = arith.constant dense<0.000000e+00> : vector<7x256xf32>
    %25 = tpu.matmul %22, %24, %cst_30 {dimension_numbers = #tpu.dot_dimension_numbers<[1], [0], [0], [1], [0, 0, 1, 1], [], []>} : vector<7x32xf32>, vector<32x256xf32>, vector<7x256xf32> -> vector<7x256xf32>
    %26 = arith.addf %20, %25 : vector<7x256xf32>
    %c0_31 = arith.constant 0 : index
    %c0_32 = arith.constant 0 : index
    %c1_33 = arith.constant 1 : index
    %c0_34 = arith.constant 0 : index
    %27 = vector.load %arg1[%c0_31, %c0_32, %c1_33, %c0_34] : memref<1x4x8x32xf32, #tpu.memory_space<vmem>>, vector<1x1x7x32xf32>
    %28 = vector.shape_cast %27 : vector<1x1x7x32xf32> to vector<7x32xf32>
    %c4 = arith.constant 4 : index
    %c0_35 = arith.constant 0 : index
    %c0_36 = arith.constant 0 : index
    %29 = vector.load %arg2[%c4, %c0_35, %c0_36] : memref<5x32x256xf32, #tpu.memory_space<vmem>>, vector<1x32x256xf32>
    %30 = vector.shape_cast %29 : vector<1x32x256xf32> to vector<32x256xf32>
    %cst_37 = arith.constant dense<0.000000e+00> : vector<7x256xf32>
    %31 = tpu.matmul %28, %30, %cst_37 {dimension_numbers = #tpu.dot_dimension_numbers<[1], [0], [0], [1], [0, 0, 1, 1], [], []>} : vector<7x32xf32>, vector<32x256xf32>, vector<7x256xf32> -> vector<7x256xf32>
    %32 = arith.addf %26, %31 : vector<7x256xf32>
    %33 = math.tanh %32 : vector<7x256xf32>
    %c0_38 = arith.constant 0 : index
    %c1_39 = arith.constant 1 : index
    %c0_40 = arith.constant 0 : index
    %c0_41 = arith.constant 0 : index
    %34 = vector.load %arg1[%c0_38, %c1_39, %c0_40, %c0_41] : memref<1x4x8x32xf32, #tpu.memory_space<vmem>>, vector<1x1x7x32xf32>
    %35 = vector.shape_cast %34 : vector<1x1x7x32xf32> to vector<7x32xf32>
    %c0_42 = arith.constant 0 : index
    %c0_43 = arith.constant 0 : index
    %c0_44 = arith.constant 0 : index
    %36 = vector.load %arg2[%c0_42, %c0_43, %c0_44] : memref<5x32x256xf32, #tpu.memory_space<vmem>>, vector<1x32x256xf32>
    %37 = vector.shape_cast %36 : vector<1x32x256xf32> to vector<32x256xf32>
    %cst_45 = arith.constant dense<0.000000e+00> : vector<7x256xf32>
    %38 = tpu.matmul %35, %37, %cst_45 {dimension_numbers = #tpu.dot_dimension_numbers<[1], [0], [0], [1], [0, 0, 1, 1], [], []>} : vector<7x32xf32>, vector<32x256xf32>, vector<7x256xf32> -> vector<7x256xf32>
    %39 = vector.broadcast %0 : vector<1x256xf32> to vector<7x256xf32>
    %40 = arith.addf %39, %38 : vector<7x256xf32>
    %c0_46 = arith.constant 0 : index
    %c2_47 = arith.constant 2 : index
    %c0_48 = arith.constant 0 : index
    %c0_49 = arith.constant 0 : index
    %41 = vector.load %arg1[%c0_46, %c2_47, %c0_48, %c0_49] : memref<1x4x8x32xf32, #tpu.memory_space<vmem>>, vector<1x1x7x32xf32>
    %42 = vector.shape_cast %41 : vector<1x1x7x32xf32> to vector<7x32xf32>
    %c1_50 = arith.constant 1 : index
    %c0_51 = arith.constant 0 : index
    %c0_52 = arith.constant 0 : index
    %43 = vector.load %arg2[%c1_50, %c0_51, %c0_52] : memref<5x32x256xf32, #tpu.memory_space<vmem>>, vector<1x32x256xf32>
    %44 = vector.shape_cast %43 : vector<1x32x256xf32> to vector<32x256xf32>
    %cst_53 = arith.constant dense<0.000000e+00> : vector<7x256xf32>
    %45 = tpu.matmul %42, %44, %cst_53 {dimension_numbers = #tpu.dot_dimension_numbers<[1], [0], [0], [1], [0, 0, 1, 1], [], []>} : vector<7x32xf32>, vector<32x256xf32>, vector<7x256xf32> -> vector<7x256xf32>
    %46 = arith.addf %40, %45 : vector<7x256xf32>
    %c0_54 = arith.constant 0 : index
    %c3_55 = arith.constant 3 : index
    %c0_56 = arith.constant 0 : index
    %c0_57 = arith.constant 0 : index
    %47 = vector.load %arg1[%c0_54, %c3_55, %c0_56, %c0_57] : memref<1x4x8x32xf32, #tpu.memory_space<vmem>>, vector<1x1x7x32xf32>
    %48 = vector.shape_cast %47 : vector<1x1x7x32xf32> to vector<7x32xf32>
    %c2_58 = arith.constant 2 : index
    %c0_59 = arith.constant 0 : index
    %c0_60 = arith.constant 0 : index
    %49 = vector.load %arg2[%c2_58, %c0_59, %c0_60] : memref<5x32x256xf32, #tpu.memory_space<vmem>>, vector<1x32x256xf32>
    %50 = vector.shape_cast %49 : vector<1x32x256xf32> to vector<32x256xf32>
    %cst_61 = arith.constant dense<0.000000e+00> : vector<7x256xf32>
    %51 = tpu.matmul %48, %50, %cst_61 {dimension_numbers = #tpu.dot_dimension_numbers<[1], [0], [0], [1], [0, 0, 1, 1], [], []>} : vector<7x32xf32>, vector<32x256xf32>, vector<7x256xf32> -> vector<7x256xf32>
    %52 = arith.addf %46, %51 : vector<7x256xf32>
    %c0_62 = arith.constant 0 : index
    %c0_63 = arith.constant 0 : index
    %c1_64 = arith.constant 1 : index
    %c0_65 = arith.constant 0 : index
    %53 = vector.load %arg1[%c0_62, %c0_63, %c1_64, %c0_65] : memref<1x4x8x32xf32, #tpu.memory_space<vmem>>, vector<1x1x7x32xf32>
    %54 = vector.shape_cast %53 : vector<1x1x7x32xf32> to vector<7x32xf32>
    %c3_66 = arith.constant 3 : index
    %c0_67 = arith.constant 0 : index
    %c0_68 = arith.constant 0 : index
    %55 = vector.load %arg2[%c3_66, %c0_67, %c0_68] : memref<5x32x256xf32, #tpu.memory_space<vmem>>, vector<1x32x256xf32>
    %56 = vector.shape_cast %55 : vector<1x32x256xf32> to vector<32x256xf32>
    %cst_69 = arith.constant dense<0.000000e+00> : vector<7x256xf32>
    %57 = tpu.matmul %54, %56, %cst_69 {dimension_numbers = #tpu.dot_dimension_numbers<[1], [0], [0], [1], [0, 0, 1, 1], [], []>} : vector<7x32xf32>, vector<32x256xf32>, vector<7x256xf32> -> vector<7x256xf32>
    %58 = arith.addf %52, %57 : vector<7x256xf32>
    %c0_70 = arith.constant 0 : index
    %c1_71 = arith.constant 1 : index
    %c1_72 = arith.constant 1 : index
    %c0_73 = arith.constant 0 : index
    %59 = vector.load %arg1[%c0_70, %c1_71, %c1_72, %c0_73] : memref<1x4x8x32xf32, #tpu.memory_space<vmem>>, vector<1x1x7x32xf32>
    %60 = vector.shape_cast %59 : vector<1x1x7x32xf32> to vector<7x32xf32>
    %c4_74 = arith.constant 4 : index
    %c0_75 = arith.constant 0 : index
    %c0_76 = arith.constant 0 : index
    %61 = vector.load %arg2[%c4_74, %c0_75, %c0_76] : memref<5x32x256xf32, #tpu.memory_space<vmem>>, vector<1x32x256xf32>
    %62 = vector.shape_cast %61 : vector<1x32x256xf32> to vector<32x256xf32>
    %cst_77 = arith.constant dense<0.000000e+00> : vector<7x256xf32>
    %63 = tpu.matmul %60, %62, %cst_77 {dimension_numbers = #tpu.dot_dimension_numbers<[1], [0], [0], [1], [0, 0, 1, 1], [], []>} : vector<7x32xf32>, vector<32x256xf32>, vector<7x256xf32> -> vector<7x256xf32>
    %64 = arith.addf %58, %63 : vector<7x256xf32>
    %65 = math.tanh %64 : vector<7x256xf32>
    %c0_78 = arith.constant 0 : index
    %c2_79 = arith.constant 2 : index
    %c0_80 = arith.constant 0 : index
    %c0_81 = arith.constant 0 : index
    %66 = vector.load %arg1[%c0_78, %c2_79, %c0_80, %c0_81] : memref<1x4x8x32xf32, #tpu.memory_space<vmem>>, vector<1x1x7x32xf32>
    %67 = vector.shape_cast %66 : vector<1x1x7x32xf32> to vector<7x32xf32>
    %c0_82 = arith.constant 0 : index
    %c0_83 = arith.constant 0 : index
    %c0_84 = arith.constant 0 : index
    %68 = vector.load %arg2[%c0_82, %c0_83, %c0_84] : memref<5x32x256xf32, #tpu.memory_space<vmem>>, vector<1x32x256xf32>
    %69 = vector.shape_cast %68 : vector<1x32x256xf32> to vector<32x256xf32>
    %cst_85 = arith.constant dense<0.000000e+00> : vector<7x256xf32>
    %70 = tpu.matmul %67, %69, %cst_85 {dimension_numbers = #tpu.dot_dimension_numbers<[1], [0], [0], [1], [0, 0, 1, 1], [], []>} : vector<7x32xf32>, vector<32x256xf32>, vector<7x256xf32> -> vector<7x256xf32>
    %71 = vector.broadcast %0 : vector<1x256xf32> to vector<7x256xf32>
    %72 = arith.addf %71, %70 : vector<7x256xf32>
    %c0_86 = arith.constant 0 : index
    %c3_87 = arith.constant 3 : index
    %c0_88 = arith.constant 0 : index
    %c0_89 = arith.constant 0 : index
    %73 = vector.load %arg1[%c0_86, %c3_87, %c0_88, %c0_89] : memref<1x4x8x32xf32, #tpu.memory_space<vmem>>, vector<1x1x7x32xf32>
    %74 = vector.shape_cast %73 : vector<1x1x7x32xf32> to vector<7x32xf32>
    %c1_90 = arith.constant 1 : index
    %c0_91 = arith.constant 0 : index
    %c0_92 = arith.constant 0 : index
    %75 = vector.load %arg2[%c1_90, %c0_91, %c0_92] : memref<5x32x256xf32, #tpu.memory_space<vmem>>, vector<1x32x256xf32>
    %76 = vector.shape_cast %75 : vector<1x32x256xf32> to vector<32x256xf32>
    %cst_93 = arith.constant dense<0.000000e+00> : vector<7x256xf32>
    %77 = tpu.matmul %74, %76, %cst_93 {dimension_numbers = #tpu.dot_dimension_numbers<[1], [0], [0], [1], [0, 0, 1, 1], [], []>} : vector<7x32xf32>, vector<32x256xf32>, vector<7x256xf32> -> vector<7x256xf32>
    %78 = arith.addf %72, %77 : vector<7x256xf32>
    %c0_94 = arith.constant 0 : index
    %c0_95 = arith.constant 0 : index
    %c1_96 = arith.constant 1 : index
    %c0_97 = arith.constant 0 : index
    %79 = vector.load %arg1[%c0_94, %c0_95, %c1_96, %c0_97] : memref<1x4x8x32xf32, #tpu.memory_space<vmem>>, vector<1x1x7x32xf32>
    %80 = vector.shape_cast %79 : vector<1x1x7x32xf32> to vector<7x32xf32>
    %c2_98 = arith.constant 2 : index
    %c0_99 = arith.constant 0 : index
    %c0_100 = arith.constant 0 : index
    %81 = vector.load %arg2[%c2_98, %c0_99, %c0_100] : memref<5x32x256xf32, #tpu.memory_space<vmem>>, vector<1x32x256xf32>
    %82 = vector.shape_cast %81 : vector<1x32x256xf32> to vector<32x256xf32>
    %cst_101 = arith.constant dense<0.000000e+00> : vector<7x256xf32>
    %83 = tpu.matmul %80, %82, %cst_101 {dimension_numbers = #tpu.dot_dimension_numbers<[1], [0], [0], [1], [0, 0, 1, 1], [], []>} : vector<7x32xf32>, vector<32x256xf32>, vector<7x256xf32> -> vector<7x256xf32>
    %84 = arith.addf %78, %83 : vector<7x256xf32>
    %c0_102 = arith.constant 0 : index
    %c1_103 = arith.constant 1 : index
    %c1_104 = arith.constant 1 : index
    %c0_105 = arith.constant 0 : index
    %85 = vector.load %arg1[%c0_102, %c1_103, %c1_104, %c0_105] : memref<1x4x8x32xf32, #tpu.memory_space<vmem>>, vector<1x1x7x32xf32>
    %86 = vector.shape_cast %85 : vector<1x1x7x32xf32> to vector<7x32xf32>
    %c3_106 = arith.constant 3 : index
    %c0_107 = arith.constant 0 : index
    %c0_108 = arith.constant 0 : index
    %87 = vector.load %arg2[%c3_106, %c0_107, %c0_108] : memref<5x32x256xf32, #tpu.memory_space<vmem>>, vector<1x32x256xf32>
    %88 = vector.shape_cast %87 : vector<1x32x256xf32> to vector<32x256xf32>
    %cst_109 = arith.constant dense<0.000000e+00> : vector<7x256xf32>
    %89 = tpu.matmul %86, %88, %cst_109 {dimension_numbers = #tpu.dot_dimension_numbers<[1], [0], [0], [1], [0, 0, 1, 1], [], []>} : vector<7x32xf32>, vector<32x256xf32>, vector<7x256xf32> -> vector<7x256xf32>
    %90 = arith.addf %84, %89 : vector<7x256xf32>
    %c0_110 = arith.constant 0 : index
    %c2_111 = arith.constant 2 : index
    %c1_112 = arith.constant 1 : index
    %c0_113 = arith.constant 0 : index
    %91 = vector.load %arg1[%c0_110, %c2_111, %c1_112, %c0_113] : memref<1x4x8x32xf32, #tpu.memory_space<vmem>>, vector<1x1x7x32xf32>
    %92 = vector.shape_cast %91 : vector<1x1x7x32xf32> to vector<7x32xf32>
    %c4_114 = arith.constant 4 : index
    %c0_115 = arith.constant 0 : index
    %c0_116 = arith.constant 0 : index
    %93 = vector.load %arg2[%c4_114, %c0_115, %c0_116] : memref<5x32x256xf32, #tpu.memory_space<vmem>>, vector<1x32x256xf32>
    %94 = vector.shape_cast %93 : vector<1x32x256xf32> to vector<32x256xf32>
    %cst_117 = arith.constant dense<0.000000e+00> : vector<7x256xf32>
    %95 = tpu.matmul %92, %94, %cst_117 {dimension_numbers = #tpu.dot_dimension_numbers<[1], [0], [0], [1], [0, 0, 1, 1], [], []>} : vector<7x32xf32>, vector<32x256xf32>, vector<7x256xf32> -> vector<7x256xf32>
    %96 = arith.addf %90, %95 : vector<7x256xf32>
    %97 = math.tanh %96 : vector<7x256xf32>
    %c0_118 = arith.constant 0 : index
    %c3_119 = arith.constant 3 : index
    %c0_120 = arith.constant 0 : index
    %c0_121 = arith.constant 0 : index
    %98 = vector.load %arg1[%c0_118, %c3_119, %c0_120, %c0_121] : memref<1x4x8x32xf32, #tpu.memory_space<vmem>>, vector<1x1x7x32xf32>
    %99 = vector.shape_cast %98 : vector<1x1x7x32xf32> to vector<7x32xf32>
    %c0_122 = arith.constant 0 : index
    %c0_123 = arith.constant 0 : index
    %c0_124 = arith.constant 0 : index
    %100 = vector.load %arg2[%c0_122, %c0_123, %c0_124] : memref<5x32x256xf32, #tpu.memory_space<vmem>>, vector<1x32x256xf32>
    %101 = vector.shape_cast %100 : vector<1x32x256xf32> to vector<32x256xf32>
    %cst_125 = arith.constant dense<0.000000e+00> : vector<7x256xf32>
    %102 = tpu.matmul %99, %101, %cst_125 {dimension_numbers = #tpu.dot_dimension_numbers<[1], [0], [0], [1], [0, 0, 1, 1], [], []>} : vector<7x32xf32>, vector<32x256xf32>, vector<7x256xf32> -> vector<7x256xf32>
    %103 = vector.broadcast %0 : vector<1x256xf32> to vector<7x256xf32>
    %104 = arith.addf %103, %102 : vector<7x256xf32>
    %c0_126 = arith.constant 0 : index
    %c0_127 = arith.constant 0 : index
    %c1_128 = arith.constant 1 : index
    %c0_129 = arith.constant 0 : index
    %105 = vector.load %arg1[%c0_126, %c0_127, %c1_128, %c0_129] : memref<1x4x8x32xf32, #tpu.memory_space<vmem>>, vector<1x1x7x32xf32>
    %106 = vector.shape_cast %105 : vector<1x1x7x32xf32> to vector<7x32xf32>
    %c1_130 = arith.constant 1 : index
    %c0_131 = arith.constant 0 : index
    %c0_132 = arith.constant 0 : index
    %107 = vector.load %arg2[%c1_130, %c0_131, %c0_132] : memref<5x32x256xf32, #tpu.memory_space<vmem>>, vector<1x32x256xf32>
    %108 = vector.shape_cast %107 : vector<1x32x256xf32> to vector<32x256xf32>
    %cst_133 = arith.constant dense<0.000000e+00> : vector<7x256xf32>
    %109 = tpu.matmul %106, %108, %cst_133 {dimension_numbers = #tpu.dot_dimension_numbers<[1], [0], [0], [1], [0, 0, 1, 1], [], []>} : vector<7x32xf32>, vector<32x256xf32>, vector<7x256xf32> -> vector<7x256xf32>
    %110 = arith.addf %104, %109 : vector<7x256xf32>
    %c0_134 = arith.constant 0 : index
    %c1_135 = arith.constant 1 : index
    %c1_136 = arith.constant 1 : index
    %c0_137 = arith.constant 0 : index
    %111 = vector.load %arg1[%c0_134, %c1_135, %c1_136, %c0_137] : memref<1x4x8x32xf32, #tpu.memory_space<vmem>>, vector<1x1x7x32xf32>
    %112 = vector.shape_cast %111 : vector<1x1x7x32xf32> to vector<7x32xf32>
    %c2_138 = arith.constant 2 : index
    %c0_139 = arith.constant 0 : index
    %c0_140 = arith.constant 0 : index
    %113 = vector.load %arg2[%c2_138, %c0_139, %c0_140] : memref<5x32x256xf32, #tpu.memory_space<vmem>>, vector<1x32x256xf32>
    %114 = vector.shape_cast %113 : vector<1x32x256xf32> to vector<32x256xf32>
    %cst_141 = arith.constant dense<0.000000e+00> : vector<7x256xf32>
    %115 = tpu.matmul %112, %114, %cst_141 {dimension_numbers = #tpu.dot_dimension_numbers<[1], [0], [0], [1], [0, 0, 1, 1], [], []>} : vector<7x32xf32>, vector<32x256xf32>, vector<7x256xf32> -> vector<7x256xf32>
    %116 = arith.addf %110, %115 : vector<7x256xf32>
    %c0_142 = arith.constant 0 : index
    %c2_143 = arith.constant 2 : index
    %c1_144 = arith.constant 1 : index
    %c0_145 = arith.constant 0 : index
    %117 = vector.load %arg1[%c0_142, %c2_143, %c1_144, %c0_145] : memref<1x4x8x32xf32, #tpu.memory_space<vmem>>, vector<1x1x7x32xf32>
    %118 = vector.shape_cast %117 : vector<1x1x7x32xf32> to vector<7x32xf32>
    %c3_146 = arith.constant 3 : index
    %c0_147 = arith.constant 0 : index
    %c0_148 = arith.constant 0 : index
    %119 = vector.load %arg2[%c3_146, %c0_147, %c0_148] : memref<5x32x256xf32, #tpu.memory_space<vmem>>, vector<1x32x256xf32>
    %120 = vector.shape_cast %119 : vector<1x32x256xf32> to vector<32x256xf32>
    %cst_149 = arith.constant dense<0.000000e+00> : vector<7x256xf32>
    %121 = tpu.matmul %118, %120, %cst_149 {dimension_numbers = #tpu.dot_dimension_numbers<[1], [0], [0], [1], [0, 0, 1, 1], [], []>} : vector<7x32xf32>, vector<32x256xf32>, vector<7x256xf32> -> vector<7x256xf32>
    %122 = arith.addf %116, %121 : vector<7x256xf32>
    %c0_150 = arith.constant 0 : index
    %c3_151 = arith.constant 3 : index
    %c1_152 = arith.constant 1 : index
    %c0_153 = arith.constant 0 : index
    %123 = vector.load %arg1[%c0_150, %c3_151, %c1_152, %c0_153] : memref<1x4x8x32xf32, #tpu.memory_space<vmem>>, vector<1x1x7x32xf32>
    %124 = vector.shape_cast %123 : vector<1x1x7x32xf32> to vector<7x32xf32>
    %c4_154 = arith.constant 4 : index
    %c0_155 = arith.constant 0 : index
    %c0_156 = arith.constant 0 : index
    %125 = vector.load %arg2[%c4_154, %c0_155, %c0_156] : memref<5x32x256xf32, #tpu.memory_space<vmem>>, vector<1x32x256xf32>
    %126 = vector.shape_cast %125 : vector<1x32x256xf32> to vector<32x256xf32>
    %cst_157 = arith.constant dense<0.000000e+00> : vector<7x256xf32>
    %127 = tpu.matmul %124, %126, %cst_157 {dimension_numbers = #tpu.dot_dimension_numbers<[1], [0], [0], [1], [0, 0, 1, 1], [], []>} : vector<7x32xf32>, vector<32x256xf32>, vector<7x256xf32> -> vector<7x256xf32>
    %128 = arith.addf %122, %127 : vector<7x256xf32>
    %129 = math.tanh %128 : vector<7x256xf32>
    %130 = arith.addf %33, %65 : vector<7x256xf32>
    %131 = arith.addf %97, %129 : vector<7x256xf32>
    %132 = vector.extract_strided_slice %130 {offsets = [0, 0], sizes = [7, 128], strides = [1, 1]} : vector<7x256xf32> to vector<7x128xf32>
    %133 = vector.extract_strided_slice %130 {offsets = [0, 128], sizes = [7, 128], strides = [1, 1]} : vector<7x256xf32> to vector<7x128xf32>
    %134 = arith.addf %132, %133 : vector<7x128xf32>
    %cst_158 = arith.constant 2.500000e-01 : f32
    %135 = vector.broadcast %cst_158 : f32 to vector<7x128xf32>
    %136 = arith.mulf %135, %134 : vector<7x128xf32>
    %137 = vector.extract_strided_slice %131 {offsets = [0, 0], sizes = [7, 128], strides = [1, 1]} : vector<7x256xf32> to vector<7x128xf32>
    %138 = vector.extract_strided_slice %131 {offsets = [0, 128], sizes = [7, 128], strides = [1, 1]} : vector<7x256xf32> to vector<7x128xf32>
    %139 = arith.addf %137, %138 : vector<7x128xf32>
    %cst_159 = arith.constant 2.500000e-01 : f32
    %140 = vector.broadcast %cst_159 : f32 to vector<7x128xf32>
    %141 = arith.mulf %140, %139 : vector<7x128xf32>
    %c0_160 = arith.constant 0 : index
    %c0_161 = arith.constant 0 : index
    %c0_162 = arith.constant 0 : index
    %142 = vector.load %arg4[%c0_160, %c0_161, %c0_162] : memref<5x128x256xf32, #tpu.memory_space<vmem>>, vector<1x128x256xf32>
    %143 = vector.shape_cast %142 : vector<1x128x256xf32> to vector<128x256xf32>
    %144 = vector.extract_strided_slice %136 {offsets = [0, 0], sizes = [5, 128], strides = [1, 1]} : vector<7x128xf32> to vector<5x128xf32>
    %cst_163 = arith.constant dense<0.000000e+00> : vector<5x256xf32>
    %145 = tpu.matmul %144, %143, %cst_163 {dimension_numbers = #tpu.dot_dimension_numbers<[1], [0], [0], [1], [0, 0, 1, 1], [], []>} : vector<5x128xf32>, vector<128x256xf32>, vector<5x256xf32> -> vector<5x256xf32>
    %146 = vector.broadcast %1 : vector<1x256xf32> to vector<5x256xf32>
    %147 = arith.addf %146, %145 : vector<5x256xf32>
    %148 = vector.extract_strided_slice %141 {offsets = [0, 0], sizes = [5, 128], strides = [1, 1]} : vector<7x128xf32> to vector<5x128xf32>
    %cst_164 = arith.constant dense<0.000000e+00> : vector<5x256xf32>
    %149 = tpu.matmul %148, %143, %cst_164 {dimension_numbers = #tpu.dot_dimension_numbers<[1], [0], [0], [1], [0, 0, 1, 1], [], []>} : vector<5x128xf32>, vector<128x256xf32>, vector<5x256xf32> -> vector<5x256xf32>
    %150 = vector.broadcast %1 : vector<1x256xf32> to vector<5x256xf32>
    %151 = arith.addf %150, %149 : vector<5x256xf32>
    %c1_165 = arith.constant 1 : index
    %c0_166 = arith.constant 0 : index
    %c0_167 = arith.constant 0 : index
    %152 = vector.load %arg4[%c1_165, %c0_166, %c0_167] : memref<5x128x256xf32, #tpu.memory_space<vmem>>, vector<1x128x256xf32>
    %153 = vector.shape_cast %152 : vector<1x128x256xf32> to vector<128x256xf32>
    %154 = vector.extract_strided_slice %141 {offsets = [0, 0], sizes = [5, 128], strides = [1, 1]} : vector<7x128xf32> to vector<5x128xf32>
    %cst_168 = arith.constant dense<0.000000e+00> : vector<5x256xf32>
    %155 = tpu.matmul %154, %153, %cst_168 {dimension_numbers = #tpu.dot_dimension_numbers<[1], [0], [0], [1], [0, 0, 1, 1], [], []>} : vector<5x128xf32>, vector<128x256xf32>, vector<5x256xf32> -> vector<5x256xf32>
    %156 = arith.addf %147, %155 : vector<5x256xf32>
    %157 = vector.extract_strided_slice %136 {offsets = [1, 0], sizes = [5, 128], strides = [1, 1]} : vector<7x128xf32> to vector<5x128xf32>
    %cst_169 = arith.constant dense<0.000000e+00> : vector<5x256xf32>
    %158 = tpu.matmul %157, %153, %cst_169 {dimension_numbers = #tpu.dot_dimension_numbers<[1], [0], [0], [1], [0, 0, 1, 1], [], []>} : vector<5x128xf32>, vector<128x256xf32>, vector<5x256xf32> -> vector<5x256xf32>
    %159 = arith.addf %151, %158 : vector<5x256xf32>
    %c2_170 = arith.constant 2 : index
    %c0_171 = arith.constant 0 : index
    %c0_172 = arith.constant 0 : index
    %160 = vector.load %arg4[%c2_170, %c0_171, %c0_172] : memref<5x128x256xf32, #tpu.memory_space<vmem>>, vector<1x128x256xf32>
    %161 = vector.shape_cast %160 : vector<1x128x256xf32> to vector<128x256xf32>
    %162 = vector.extract_strided_slice %136 {offsets = [1, 0], sizes = [5, 128], strides = [1, 1]} : vector<7x128xf32> to vector<5x128xf32>
    %cst_173 = arith.constant dense<0.000000e+00> : vector<5x256xf32>
    %163 = tpu.matmul %162, %161, %cst_173 {dimension_numbers = #tpu.dot_dimension_numbers<[1], [0], [0], [1], [0, 0, 1, 1], [], []>} : vector<5x128xf32>, vector<128x256xf32>, vector<5x256xf32> -> vector<5x256xf32>
    %164 = arith.addf %156, %163 : vector<5x256xf32>
    %165 = vector.extract_strided_slice %141 {offsets = [1, 0], sizes = [5, 128], strides = [1, 1]} : vector<7x128xf32> to vector<5x128xf32>
    %cst_174 = arith.constant dense<0.000000e+00> : vector<5x256xf32>
    %166 = tpu.matmul %165, %161, %cst_174 {dimension_numbers = #tpu.dot_dimension_numbers<[1], [0], [0], [1], [0, 0, 1, 1], [], []>} : vector<5x128xf32>, vector<128x256xf32>, vector<5x256xf32> -> vector<5x256xf32>
    %167 = arith.addf %159, %166 : vector<5x256xf32>
    %c3_175 = arith.constant 3 : index
    %c0_176 = arith.constant 0 : index
    %c0_177 = arith.constant 0 : index
    %168 = vector.load %arg4[%c3_175, %c0_176, %c0_177] : memref<5x128x256xf32, #tpu.memory_space<vmem>>, vector<1x128x256xf32>
    %169 = vector.shape_cast %168 : vector<1x128x256xf32> to vector<128x256xf32>
    %170 = vector.extract_strided_slice %141 {offsets = [1, 0], sizes = [5, 128], strides = [1, 1]} : vector<7x128xf32> to vector<5x128xf32>
    %cst_178 = arith.constant dense<0.000000e+00> : vector<5x256xf32>
    %171 = tpu.matmul %170, %169, %cst_178 {dimension_numbers = #tpu.dot_dimension_numbers<[1], [0], [0], [1], [0, 0, 1, 1], [], []>} : vector<5x128xf32>, vector<128x256xf32>, vector<5x256xf32> -> vector<5x256xf32>
    %172 = arith.addf %164, %171 : vector<5x256xf32>
    %173 = vector.extract_strided_slice %136 {offsets = [2, 0], sizes = [5, 128], strides = [1, 1]} : vector<7x128xf32> to vector<5x128xf32>
    %cst_179 = arith.constant dense<0.000000e+00> : vector<5x256xf32>
    %174 = tpu.matmul %173, %169, %cst_179 {dimension_numbers = #tpu.dot_dimension_numbers<[1], [0], [0], [1], [0, 0, 1, 1], [], []>} : vector<5x128xf32>, vector<128x256xf32>, vector<5x256xf32> -> vector<5x256xf32>
    %175 = arith.addf %167, %174 : vector<5x256xf32>
    %c4_180 = arith.constant 4 : index
    %c0_181 = arith.constant 0 : index
    %c0_182 = arith.constant 0 : index
    %176 = vector.load %arg4[%c4_180, %c0_181, %c0_182] : memref<5x128x256xf32, #tpu.memory_space<vmem>>, vector<1x128x256xf32>
    %177 = vector.shape_cast %176 : vector<1x128x256xf32> to vector<128x256xf32>
    %178 = vector.extract_strided_slice %136 {offsets = [2, 0], sizes = [5, 128], strides = [1, 1]} : vector<7x128xf32> to vector<5x128xf32>
    %cst_183 = arith.constant dense<0.000000e+00> : vector<5x256xf32>
    %179 = tpu.matmul %178, %177, %cst_183 {dimension_numbers = #tpu.dot_dimension_numbers<[1], [0], [0], [1], [0, 0, 1, 1], [], []>} : vector<5x128xf32>, vector<128x256xf32>, vector<5x256xf32> -> vector<5x256xf32>
    %180 = arith.addf %172, %179 : vector<5x256xf32>
    %181 = vector.extract_strided_slice %141 {offsets = [2, 0], sizes = [5, 128], strides = [1, 1]} : vector<7x128xf32> to vector<5x128xf32>
    %cst_184 = arith.constant dense<0.000000e+00> : vector<5x256xf32>
    %182 = tpu.matmul %181, %177, %cst_184 {dimension_numbers = #tpu.dot_dimension_numbers<[1], [0], [0], [1], [0, 0, 1, 1], [], []>} : vector<5x128xf32>, vector<128x256xf32>, vector<5x256xf32> -> vector<5x256xf32>
    %183 = arith.addf %175, %182 : vector<5x256xf32>
    %184 = math.tanh %180 : vector<5x256xf32>
    %185 = math.tanh %183 : vector<5x256xf32>
    %186 = arith.addf %184, %185 : vector<5x256xf32>
    %187 = vector.extract_strided_slice %186 {offsets = [0, 0], sizes = [5, 128], strides = [1, 1]} : vector<5x256xf32> to vector<5x128xf32>
    %188 = vector.extract_strided_slice %186 {offsets = [0, 128], sizes = [5, 128], strides = [1, 1]} : vector<5x256xf32> to vector<5x128xf32>
    %189 = arith.addf %187, %188 : vector<5x128xf32>
    %cst_185 = arith.constant 2.500000e-01 : f32
    %190 = vector.broadcast %cst_185 : f32 to vector<5x128xf32>
    %191 = arith.mulf %190, %189 : vector<5x128xf32>
    %c0_186 = arith.constant 0 : index
    %c0_187 = arith.constant 0 : index
    %192 = vector.load %arg7[%c0_186, %c0_187] : memref<1x128xf32, #tpu.memory_space<vmem>>, vector<1x128xf32>
    %193 = vector.extract_strided_slice %191 {offsets = [0, 0], sizes = [1, 128], strides = [1, 1]} : vector<5x128xf32> to vector<1x128xf32>
    %c0_188 = arith.constant 0 : index
    %c0_189 = arith.constant 0 : index
    %c0_190 = arith.constant 0 : index
    %194 = vector.load %arg6[%c0_188, %c0_189, %c0_190] : memref<5x128x128xf32, #tpu.memory_space<vmem>>, vector<1x128x128xf32>
    %195 = vector.shape_cast %194 : vector<1x128x128xf32> to vector<128x128xf32>
    %cst_191 = arith.constant dense<0.000000e+00> : vector<1x128xf32>
    %196 = tpu.matmul %193, %195, %cst_191 {dimension_numbers = #tpu.dot_dimension_numbers<[1], [0], [0], [1], [0, 0, 1, 1], [], []>} : vector<1x128xf32>, vector<128x128xf32>, vector<1x128xf32> -> vector<1x128xf32>
    %197 = arith.addf %192, %196 : vector<1x128xf32>
    %198 = vector.extract_strided_slice %191 {offsets = [1, 0], sizes = [1, 128], strides = [1, 1]} : vector<5x128xf32> to vector<1x128xf32>
    %c1_192 = arith.constant 1 : index
    %c0_193 = arith.constant 0 : index
    %c0_194 = arith.constant 0 : index
    %199 = vector.load %arg6[%c1_192, %c0_193, %c0_194] : memref<5x128x128xf32, #tpu.memory_space<vmem>>, vector<1x128x128xf32>
    %200 = vector.shape_cast %199 : vector<1x128x128xf32> to vector<128x128xf32>
    %cst_195 = arith.constant dense<0.000000e+00> : vector<1x128xf32>
    %201 = tpu.matmul %198, %200, %cst_195 {dimension_numbers = #tpu.dot_dimension_numbers<[1], [0], [0], [1], [0, 0, 1, 1], [], []>} : vector<1x128xf32>, vector<128x128xf32>, vector<1x128xf32> -> vector<1x128xf32>
    %202 = arith.addf %197, %201 : vector<1x128xf32>
    %203 = vector.extract_strided_slice %191 {offsets = [2, 0], sizes = [1, 128], strides = [1, 1]} : vector<5x128xf32> to vector<1x128xf32>
    %c2_196 = arith.constant 2 : index
    %c0_197 = arith.constant 0 : index
    %c0_198 = arith.constant 0 : index
    %204 = vector.load %arg6[%c2_196, %c0_197, %c0_198] : memref<5x128x128xf32, #tpu.memory_space<vmem>>, vector<1x128x128xf32>
    %205 = vector.shape_cast %204 : vector<1x128x128xf32> to vector<128x128xf32>
    %cst_199 = arith.constant dense<0.000000e+00> : vector<1x128xf32>
    %206 = tpu.matmul %203, %205, %cst_199 {dimension_numbers = #tpu.dot_dimension_numbers<[1], [0], [0], [1], [0, 0, 1, 1], [], []>} : vector<1x128xf32>, vector<128x128xf32>, vector<1x128xf32> -> vector<1x128xf32>
    %207 = arith.addf %202, %206 : vector<1x128xf32>
    %208 = vector.extract_strided_slice %191 {offsets = [3, 0], sizes = [1, 128], strides = [1, 1]} : vector<5x128xf32> to vector<1x128xf32>
    %c3_200 = arith.constant 3 : index
    %c0_201 = arith.constant 0 : index
    %c0_202 = arith.constant 0 : index
    %209 = vector.load %arg6[%c3_200, %c0_201, %c0_202] : memref<5x128x128xf32, #tpu.memory_space<vmem>>, vector<1x128x128xf32>
    %210 = vector.shape_cast %209 : vector<1x128x128xf32> to vector<128x128xf32>
    %cst_203 = arith.constant dense<0.000000e+00> : vector<1x128xf32>
    %211 = tpu.matmul %208, %210, %cst_203 {dimension_numbers = #tpu.dot_dimension_numbers<[1], [0], [0], [1], [0, 0, 1, 1], [], []>} : vector<1x128xf32>, vector<128x128xf32>, vector<1x128xf32> -> vector<1x128xf32>
    %212 = arith.addf %207, %211 : vector<1x128xf32>
    %213 = vector.extract_strided_slice %191 {offsets = [4, 0], sizes = [1, 128], strides = [1, 1]} : vector<5x128xf32> to vector<1x128xf32>
    %c4_204 = arith.constant 4 : index
    %c0_205 = arith.constant 0 : index
    %c0_206 = arith.constant 0 : index
    %214 = vector.load %arg6[%c4_204, %c0_205, %c0_206] : memref<5x128x128xf32, #tpu.memory_space<vmem>>, vector<1x128x128xf32>
    %215 = vector.shape_cast %214 : vector<1x128x128xf32> to vector<128x128xf32>
    %cst_207 = arith.constant dense<0.000000e+00> : vector<1x128xf32>
    %216 = tpu.matmul %213, %215, %cst_207 {dimension_numbers = #tpu.dot_dimension_numbers<[1], [0], [0], [1], [0, 0, 1, 1], [], []>} : vector<1x128xf32>, vector<128x128xf32>, vector<1x128xf32> -> vector<1x128xf32>
    %217 = arith.addf %212, %216 : vector<1x128xf32>
    %218 = math.tanh %217 : vector<1x128xf32>
    %c0_208 = arith.constant 0 : index
    %c0_209 = arith.constant 0 : index
    %219 = vector.load %arg8[%c0_208, %c0_209] : memref<128x128xf32, #tpu.memory_space<vmem>>, vector<128x128xf32>
    %cst_210 = arith.constant dense<0.000000e+00> : vector<1x128xf32>
    %220 = tpu.matmul %218, %219, %cst_210 {dimension_numbers = #tpu.dot_dimension_numbers<[1], [0], [0], [1], [0, 0, 1, 1], [], []>} : vector<1x128xf32>, vector<128x128xf32>, vector<1x128xf32> -> vector<1x128xf32>
    %c0_211 = arith.constant 0 : index
    %c0_212 = arith.constant 0 : index
    %221 = vector.load %arg9[%c0_211, %c0_212] : memref<1x128xf32, #tpu.memory_space<vmem>>, vector<1x128xf32>
    %222 = arith.addf %220, %221 : vector<1x128xf32>
    %223 = math.tanh %222 : vector<1x128xf32>
    %c0_213 = arith.constant 0 : index
    %c0_214 = arith.constant 0 : index
    %224 = vector.load %arg10[%c0_213, %c0_214] : memref<128x128xf32, #tpu.memory_space<vmem>>, vector<128x128xf32>
    %cst_215 = arith.constant dense<0.000000e+00> : vector<1x128xf32>
    %225 = tpu.matmul %223, %224, %cst_215 {dimension_numbers = #tpu.dot_dimension_numbers<[1], [0], [0], [1], [0, 0, 1, 1], [], []>} : vector<1x128xf32>, vector<128x128xf32>, vector<1x128xf32> -> vector<1x128xf32>
    %c0_216 = arith.constant 0 : index
    %c0_217 = arith.constant 0 : index
    %226 = vector.load %arg11[%c0_216, %c0_217] : memref<1x128xf32, #tpu.memory_space<vmem>>, vector<1x128xf32>
    %227 = arith.addf %225, %226 : vector<1x128xf32>
    %c0_218 = arith.constant 0 : index
    %c0_219 = arith.constant 0 : index
    %c0_220 = arith.constant 0 : index
    %228 = vector.load %arg12[%c0_218, %c0_219, %c0_220] : memref<1x1x128xf32, #tpu.memory_space<vmem>>, vector<1x1x128xf32>
    %229 = vector.shape_cast %228 : vector<1x1x128xf32> to vector<1x128xf32>
    %230 = vector.shape_cast %227 : vector<1x128xf32> to vector<1x1x128xf32>
    tpu.vector_store %arg12[%c0_218, %c0_219, %c0_220], %230 {strides = array<i32>} : memref<1x1x128xf32, #tpu.memory_space<vmem>>, vector<1x1x128xf32>,
    return
  }
  func.func @transform_0(%arg0: i32) -> (i32, i32, i32, i32) {
    %c0_i32 = arith.constant 0 : i32
    %c0_i32_0 = arith.constant 0 : i32
    %c0_i32_1 = arith.constant 0 : i32
    %c0_i32_2 = arith.constant 0 : i32
    return %arg0, %c0_i32, %c0_i32_0, %c0_i32_1 : i32, i32, i32, i32
  }
  func.func @transform_1(%arg0: i32) -> (i32, i32, i32) {
    %c0_i32 = arith.constant 0 : i32
    %c0_i32_0 = arith.constant 0 : i32
    %c0_i32_1 = arith.constant 0 : i32
    %c0_i32_2 = arith.constant 0 : i32
    return %c0_i32, %c0_i32_0, %c0_i32_1 : i32, i32, i32
  }
  func.func @transform_2(%arg0: i32) -> (i32, i32) {
    %c0_i32 = arith.constant 0 : i32
    %c0_i32_0 = arith.constant 0 : i32
    %c0_i32_1 = arith.constant 0 : i32
    return %c0_i32, %c0_i32_0 : i32, i32
  }
  func.func @transform_3(%arg0: i32) -> (i32, i32, i32) {
    %c0_i32 = arith.constant 0 : i32
    %c0_i32_0 = arith.constant 0 : i32
    %c0_i32_1 = arith.constant 0 : i32
    %c0_i32_2 = arith.constant 0 : i32
    return %c0_i32, %c0_i32_0, %c0_i32_1 : i32, i32, i32
  }
  func.func @transform_4(%arg0: i32) -> (i32, i32) {
    %c0_i32 = arith.constant 0 : i32
    %c0_i32_0 = arith.constant 0 : i32
    %c0_i32_1 = arith.constant 0 : i32
    return %c0_i32, %c0_i32_0 : i32, i32
  }
  func.func @transform_5(%arg0: i32) -> (i32, i32, i32) {
    %c0_i32 = arith.constant 0 : i32
    %c0_i32_0 = arith.constant 0 : i32
    %c0_i32_1 = arith.constant 0 : i32
    %c0_i32_2 = arith.constant 0 : i32
    return %c0_i32, %c0_i32_0, %c0_i32_1 : i32, i32, i32
  }
  func.func @transform_6(%arg0: i32) -> (i32, i32) {
    %c0_i32 = arith.constant 0 : i32
    %c0_i32_0 = arith.constant 0 : i32
    %c0_i32_1 = arith.constant 0 : i32
    return %c0_i32, %c0_i32_0 : i32, i32
  }
  func.func @transform_7(%arg0: i32) -> (i32, i32) {
    %c0_i32 = arith.constant 0 : i32
    %c0_i32_0 = arith.constant 0 : i32
    %c0_i32_1 = arith.constant 0 : i32
    return %c0_i32, %c0_i32_0 : i32, i32
  }
  func.func @transform_8(%arg0: i32) -> (i32, i32) {
    %c0_i32 = arith.constant 0 : i32
    %c0_i32_0 = arith.constant 0 : i32
    %c0_i32_1 = arith.constant 0 : i32
    return %c0_i32, %c0_i32_0 : i32, i32
  }
  func.func @transform_9(%arg0: i32) -> (i32, i32) {
    %c0_i32 = arith.constant 0 : i32
    %c0_i32_0 = arith.constant 0 : i32
    %c0_i32_1 = arith.constant 0 : i32
    return %c0_i32, %c0_i32_0 : i32, i32
  }
  func.func @transform_10(%arg0: i32) -> (i32, i32) {
    %c0_i32 = arith.constant 0 : i32
    %c0_i32_0 = arith.constant 0 : i32
    %c0_i32_1 = arith.constant 0 : i32
    return %c0_i32, %c0_i32_0 : i32, i32
  }
  func.func @transform_11(%arg0: i32) -> (i32, i32, i32) {
    %c0_i32 = arith.constant 0 : i32
    %c0_i32_0 = arith.constant 0 : i32
    %c0_i32_1 = arith.constant 0 : i32
    return %arg0, %c0_i32, %c0_i32_0 : i32, i32, i32
  }
}

</mosaic_0001>

<bundles_post_ra>
// kernel: lenet5_forward.1
= control target key start
LH: loop header
LB: loop body
LE: loop exit
PB: predicated region body
PF: predicated region fallthrough
CT: control target
= control target key end

     0   :  { %s3822_s0 = inlined_call_operand.vmem [shape: f32[2,4,8,32], index: 0, kind: input, shape index: {}]   ;;  %s3823_s1 = inlined_call_operand.vmem [shape: f32[5,32,256], index: 1, kind: input, shape index: {}]   ;;  %s3824_s2 = inlined_call_operand.vmem [shape: f32[1,256], index: 2, kind: input, shape index: {}]   ;;  %s3825_s3 = inlined_call_operand.hbm [shape: f32[5,128,256], index: 3, kind: input, shape index: {}]   ;;  %s3826_s4 = inlined_call_operand.vmem [shape: f32[1,256], index: 4, kind: input, shape index: {}]   ;;  %s3827_s5 = inlined_call_operand.hbm [shape: f32[5,128,128], index: 5, kind: input, shape index: {}]   ;;  %s3828_s6 = inlined_call_operand.vmem [shape: f32[1,128], index: 6, kind: input, shape index: {}]   ;;  %s3829_s7 = inlined_call_operand.vmem [shape: f32[128,128], index: 7, kind: input, shape index: {}]   ;;  %s3830_s8 = inlined_call_operand.vmem [shape: f32[1,128], index: 8, kind: input, shape index: {}]   ;;  %s3831_s9 = inlined_call_operand.vmem [shape: f32[128,128], index: 9, kind: input, shape index: {}]   ;;  %s3832_s10 = inlined_call_operand.vmem [shape: f32[1,128], index: 10, kind: input, shape index: {}]   ;;  %s3833_s11 = inlined_call_operand.hbm [shape: f32[2,1,128], index: 11, kind: output, shape index: {}]  }
   0x1   :  { %3835 = sst [smem:[#allocation13_spill]] %s3825_s3 }
   0x2   :  { %16 = vsyncpa [#allocation3], 0 }
   0x3   :  { %17 = vsyncpa [#allocation6], 0 }
   0x4   :  { %18 = vsyncpa [#allocation4], 0 }
   0x5   :  { %20 = vsyncpa [#allocation4 + $0x1], 0  ;;  %s2715_s17 = smov 0   ;;  %s2717_s18 = smov 0  }
   0x6   :  { %s2719_s19 = smov 0   ;;  %s2721_s20 = smov 0  }
   0x7 LB: > { %3836 = sst [smem:[#allocation11_spill]] %s2643_s19  ;;  %s2736_s21 = sadd.s32 4294967295, %s2647_s20   ;;  %s2647_s20 = sphi %s2721_s20, %s3846_s20   ;;  %s2643_s19 = sphi %s2719_s19, %s3843_s19   ;;  %s2639_s18 = sphi %s2717_s18, %s3845_s18   ;;  %s2635_s17 = sphi %s2715_s17, %s3844_s17  }
   0x8   : > { %s2334_s22 = sadd.s32 4294967294, %s2647_s20   ;;  %s2740_s23 = sadd.s32 1, %s2647_s20  }
   0x9   : > { %s269_s24 = sadd.s32 1, %s2643_s19  ;;  %s266_s25 = ssub.s32 %s2647_s20, %s2740_s23 }
   0xa   : > { %p279_p0 = scmp.ne.s32.totalorder %s2643_s19, %s2639_s18  ;;  %p267_p1 = scmp.eq.s32.totalorder %s266_s25, 0 }
   0xb   : > { %p280_p2 = scmp.eq.s32.totalorder %s2736_s21, 1  ;;  %p285_p3 = scmp.ne.s32.totalorder %s2639_s18, %s2635_s17 }
   0xc   : > { %p286_p4 = scmp.eq.s32.totalorder %s2334_s22, 1  ;;  %p2335_p7 = scmp.ge.s32.totalorder %s2647_s20, 1 }
   0xd   : > { %s2751_s26 = scalar_select %p267_p1, %s2643_s19, %s269_s24  }
   0xe   : > { %p2753_p5 = por %p280_p2, %p279_p0  ;;  %p2757_p6 = por %p286_p4, %p285_p3 }
   0xf   : > { %3837 = sst [smem:[#allocation12_spill]] %s2751_s26  ;;  %p293_p8 = scmp.lt.s32.totalorder %s2647_s20, 3 }
  0x10   : > { %p2446_p9 = scmp.eq.s32.totalorder %s2736_s21, 0  ;;  %s3841_s3 = sld [smem:[#allocation13_spill]] }
  0x11   : > { %p2764_p10 = pnand %p2335_p7, %p293_p8  ;;  %s2649_s14 = smov [#allocation2]  }
  0x12   : > { %s312_s15 = sshll.u32 %s2649_s14, 4  ;;  %s327_s24 = sshll.u32 %s3827_s5, 4  ;;  %s313_s15 = int_to_ptr.vmem [resolvable:$true] %s312_s15  ;;  %s328_s24 = int_to_ptr.hbm [resolvable:$true] %s327_s24 }
  0x13   : > { %p2435_p11 = pneg %p2764_p10  ;;  %s2650_s25 = smov 256  }
  0x14   : > { %s2651_s26 = smov 16   ;;  %s2652_s19 = smov [#allocation5]  }
  0x15   : > { %p2436_p12 = pnand %p2446_p9, %p2435_p11  ;;  %s329_s30 = sshll.u32 %s2652_s19, 4  ;;  %s330_s30 = int_to_ptr.vmem [resolvable:$true] %s329_s30 }
  0x16   : > { %s310_s13 = sshll.u32 %s3841_s3, 4  ;;  %s2653_s12 = smov 128   ;;  %s311_s13 = int_to_ptr.hbm [resolvable:$true] %s310_s13 }
  0x17   : > { %2438 = dma.hbm_to_vmem [thread:$0]  (!%p2436_p12), %s311_s13, 20480, %s313_s15, [#allocation3], %s2650_s25, %s2650_s25, %s2651_s26  }
  0x18   : > { %s2654_s3 = smov 8   ;;  %368 = sbr.rel (%p2764_p10) target bundleno = 959 (0x3bf), region = 64 }
  0x19   : > { %2441 = dma.hbm_to_vmem [thread:$0]  (!%p2436_p12), %s328_s24, 10240, %s330_s30, [#allocation6], %s2653_s12, %s2653_s12, %s2654_s3  }
  0x1d   : > { %2622 = dma.done.wait (%p2446_p9), [#allocation3], 20480  }
  0x1e   : > { %2624 = vsyncadd (%p2446_p9), [#allocation3], 4294946816 }
  0x1f   : > { %2626 = dma.done.wait (%p2446_p9), [#allocation6], 10240  }
  0x20   : > { %2628 = vsyncadd (%p2446_p9), [#allocation6], 4294957056  ;;  %p413_p13 = scmp.lt.s32.totalorder %s2736_s21, 1  ;;  %v2793_v0 = vld [vmem:[%s3823_s1 + $0x30] sm:$0xff]  ;;  %v2803_v2 = vld [vmem:[%s3823_s1 + $0x20] sm:$0xff]  ;;  %vm429_vm0 = vcmask 261120   ;;  %s2253_s25 = scalar_lea.hbm %s3833_s11, %s2736_s21 }
  0x21   : > { %v2798_v1 = vld [vmem:[%s3823_s1 + $0xf0] sm:$0xff]  ;;  %445 = vmatpush.msra.mxu3 %v2793_v0  ;;  %v2810_v3 = vld [vmem:[%s3823_s1 + $0xe0] sm:$0xff]  ;;  %v2865_v13 = vld [vmem:[%s3823_s1 + $0x38] sm:$0xff]  ;;  %s411_s15 = sand.u32 1, %s2639_s18   ;;  %s2597_s16 = scalar_lea.hbm %s3833_s11, 2 }
  0x22   : > { %s414_s19 = scalar_select %p413_p13, %s2736_s21, 1  ;;  %618 = vmatpush.msra.mxu2 %v2798_v1  ;;  %v2815_v4 = vld [vmem:[%s3823_s1 + $0xb0] sm:$0xff]  ;;  %v2831_v7 = vld [vmem:[%s3823_s1 + $0xa0] sm:$0xff]  ;;  %v2881_v15 = vld [vmem:[%s3823_s1 + $0x28] sm:$0xff] }
  0x23   : > { %v2820_v5 = vld [vmem:[%s3823_s1 + $0x10] sm:$0xff]  ;;  %562 = vmatpush.msra.mxu0 %v2815_v4  ;;  %446 = vmatpush.msra.mxu3 %v2803_v2  ;;  %v2843_v8 = vld [vmem:[%s3823_s1] sm:$0xff]  ;;  %v2892_v17 = vld [vmem:[%s3823_s1 + $0x18] sm:$0xff]  ;;  %s2245_s26 = scalar_lea.sflag [#allocation4], %s411_s15 }
  0x24   : > { %s2424_s3 = sshll.u32 %s414_s19, 5  ;;  %v2826_v6 = vld [vmem:[%s3823_s1 + $0xd0] sm:$0xff]  ;;  %619 = vmatpush.msra.mxu2 %v2810_v3  ;;  %v2849_v9 = vld [vmem:[%s3823_s1 + $0xc0] sm:$0xff]  ;;  %v2904_v19 = vld [vmem:[%s3823_s1 + $0xb8] sm:$0xff]  ;;  %s2257_s19 = sshll.u32 %s2253_s25, 4  ;;  %s2258_s19 = int_to_ptr.hbm [resolvable:$true] %s2257_s19 }
  0x25   : > { %s2836_s22 = scalar_lea.vmem %s3822_s0, %s2424_s3  ;;  %563 = vmatpush.msra.mxu0 %v2831_v7  ;;  %v2854_v10 = vld [vmem:[%s3823_s1 + $0x90] sm:$0xff]  ;;  %447 = vmatpush.msra.mxu3 %v2820_v5  ;;  %v2873_v14 = vld [vmem:[%s3823_s1 + $0x80] sm:$0xff]  ;;  %v2911_v20 = vld [vmem:[%s3823_s1 + $0x8] sm:$0xff]  ;;  %s2591_s29 = sshra.s32 %s2258_s19, 4  ;;  %s2592_s29 = int_to_ptr.hbm [resolvable:$true] %s2591_s29 }
  0x26   : > { %620 = vmatpush.msra.mxu2 %v2826_v6  ;;  %v420_v11 = vld [vmem:[%s2836_s22] sm:$0x7f]  ;;  %v2860_v12 = vld [vmem:[%s2836_s22 + $0x18] sm:$0x7f]  ;;  %v2886_v16 = vld [vmem:[%s2836_s22 + $0x10] sm:$0x7f]  ;;  %582 = vmatpush.msra.mxu1 %v2904_v19  ;;  %p2598_p3 = scmp.lt.s32.totalorder %s2592_s29, %s3833_s11 }
  0x27   : > { %564 = vmatpush.msra.mxu0 %v2854_v10  ;;  %448 = vmatpush.msra.mxu3 %v2843_v8  ;;  %v2897_v18 = vld [vmem:[%s3823_s1 + $0x130] sm:$0xff]  ;;  %v2916_v21 = vld [vmem:[%s3823_s1 + $0x120] sm:$0xff]  ;;  %v2922_v22 = vld [vmem:[%s3823_s1 + $0xa8] sm:$0xff]  ;;  %s2593_s13 = scalar_lea.hbm %s2592_s29, 1 }
  0x28   : > { %621 = vmatpush.msra.mxu2 %v2849_v9  ;;  %2344 = vmatmul.msk.f32.vlgmr.msra.gmra.mxu3 %vm429_vm0, %v420_v11  ;;  %v2928_v23 = vld [vmem:[%s2836_s22 + $0x8] sm:$0x7f]  ;;  %v2933_v24 = vld [vmem:[%s3823_s1 + $0x70] sm:$0xff]  ;;  %v2948_v26 = vld [vmem:[%s3823_s1 + $0x60] sm:$0xff]  ;;  %p2594_p0 = scmp.ne.s32.totalorder %s2592_s29, %s2593_s13  ;;  %p2599_p4 = scmp.lt.s32.totalorder %s2597_s16, %s2593_s13 }
  0x29   : > { %2377 = vmatmul.msk.f32.vlgmr.msra.gmra.mxu2 %vm429_vm0, %v2860_v12  ;;  %465 = vmatpush.msrb.mxu3 %v2865_v13  ;;  %v2941_v25 = vld [vmem:[%s3823_s1 + $0x110] sm:$0xff]  ;;  %v2953_v27 = vld [vmem:[%s3823_s1 + $0x98] sm:$0xff]  ;;  %v2961_v28 = vld [vmem:[%s3823_s1 + $0x100] sm:$0xff] }
  0x2a   : > { %717 = vmatpush.msrb.mxu2 %v2793_v0  ;;  %565 = vmatpush.msra.mxu0 %v2873_v14  ;;  %v2966_v29 = vld [vmem:[%s2836_s22 + $0x1] sm:$0x7f]  ;;  %v2971_v30 = vld [vmem:[%s3823_s1 + $0x50] sm:$0xff]  ;;  %v2985_v32 = vld [vmem:[%s3823_s1 + $0x88] sm:$0xff]  ;;  %p2595_p1 = pnand %p2594_p0, %p2753_p5  ;;  %p2600_p7 = por %p2599_p4, %p2598_p3 }
  0x2b   : > { %466 = vmatpush.msrb.mxu3 %v2881_v15  ;;  %2366 = vmatmul.msk.f32.vlgmr.msra.gmra.mxu0 %vm429_vm0, %v2886_v16  ;;  %v2980_v31 = vld [vmem:[%s3823_s1 + $0x40] sm:$0xff]  ;;  %v2996_v33 = vld [vmem:[%s3823_s1 + $0x78] sm:$0xff]  ;;  %v3008_v34 = vld [vmem:[%s3823_s1 + $0x68] sm:$0xff] }
  0x2c   : > { %718 = vmatpush.msrb.mxu2 %v2803_v2  ;;  %673 = vmatpush.msrb.mxu0 %v2897_v18  ;;  %v3016_v35 = vld [vmem:[%s3823_s1 + $0x58] sm:$0xff]  ;;  %v3033_v37 = vld [vmem:[%s3823_s1 + $0x48] sm:$0xff]  ;;  %v3162_v46 = vld [vmem:[%s2836_s22 + $0x11] sm:$0x7f]  ;;  %p2596_p2 = pneg %p2595_p1 }
  0x2d   : > { %467 = vmatpush.msrb.mxu3 %v2892_v17  ;;  %583 = vmatpush.msra.mxu1 %v2922_v22  ;;  %v3025_v36 = vld [vmem:[%s3823_s1 + $0x138] sm:$0xff]  ;;  %v3039_v38 = vld [vmem:[%s2836_s22 + $0x9] sm:$0x7f]  ;;  %v1391_v48 = vld [vmem:[#allocation2 + $0xf0] sm:$0xff] }
  0x2e   : > { %719 = vmatpush.msrb.mxu2 %v2820_v5  ;;  %674 = vmatpush.msrb.mxu0 %v2916_v21  ;;  %v3044_v39 = vld [vmem:[%s3823_s1 + $0xf8] sm:$0xff]  ;;  %v3055_v40 = vld [vmem:[%s3823_s1 + $0xe8] sm:$0xff]  ;;  %v1389_v50 = vld [vmem:[#allocation2 + $0xe0] sm:$0xff]  ;;  %p2601_p8 = pnand %p2600_p7, %p2596_p2 }
  0x2f   : > { %468 = vmatpush.msrb.mxu3 %v2911_v20  ;;  %584 = vmatpush.msra.mxu1 %v2953_v27  ;;  %v3060_v41 = vld [vmem:[%s3823_s1 + $0x128] sm:$0xff]  ;;  %v3069_v42 = vld [vmem:[%s3823_s1 + $0xd8] sm:$0xff]  ;;  %v1387_v52 = vld [vmem:[#allocation2 + $0xd0] sm:$0xff] }
  0x30   : > { %720 = vmatpush.msrb.mxu2 %v2843_v8  ;;  %2345 = vmatmul.msk.f32.vlgmr.msrb.gmra.mxu3 %vm429_vm0, %v420_v11  ;;  %v3078_v43 = vld [vmem:[%s3823_s1 + $0xc8] sm:$0xff]  ;;  %v3084_v44 = vld [vmem:[%s3823_s1 + $0x118] sm:$0xff]  ;;  %v1385_v54 = vld [vmem:[#allocation2 + $0xc0] sm:$0xff] }
  0x31   : > { %2389 = vmatmul.msk.f32.vlgmr.msrb.gmra.mxu2 %vm429_vm0, %v2928_v23  ;;  %506 = vmatpush.msra.mxu3 %v2933_v24  ;;  %v3096_v45 = vld [vmem:[%s3823_s1 + $0x108] sm:$0xff]  ;;  %v2419_v47 = vld [vmem:[%s2836_s22 + $0x19] sm:$0x7f]  ;;  %v1383_v57 = vld [vmem:[#allocation2 + $0xb0] sm:$0xff]  ;;  %s412_s22 = scalar_lea.vmem [#allocation7], %s411_s15 }
  0x32   : > { %675 = vmatpush.msrb.mxu0 %v2941_v25  ;;  %801 = vmatpush.msra.mxu2 %v2815_v4  ;;  %v1392_v49 = vld [vmem:[#allocation2 + $0xf8] sm:$0xff]  ;;  %v1390_v51 = vld [vmem:[#allocation2 + $0xe8] sm:$0xff]  ;;  %v1381_v59 = vld [vmem:[#allocation2 + $0xa0] sm:$0xff]  ;;  %s2255_s3 = sshll.u32 %s412_s22, 4  ;;  %s2256_s3 = int_to_ptr.vmem [resolvable:$true] %s2255_s3 }
  0x33   : > { %507 = vmatpush.msra.mxu3 %v2948_v26  ;;  %585 = vmatpush.msra.mxu1 %v2985_v32  ;;  %v1388_v53 = vld [vmem:[#allocation2 + $0xd8] sm:$0xff]  ;;  %v1386_v55 = vld [vmem:[#allocation2 + $0xc8] sm:$0xff]  ;;  %v1379_v61 = vld [vmem:[#allocation2 + $0x90] sm:$0xff] }
  0x34   : > { %676 = vmatpush.msrb.mxu0 %v2961_v28  ;;  %802 = vmatpush.msra.mxu2 %v2831_v7  ;;  %v1384_v58 = vld [vmem:[#allocation2 + $0xb8] sm:$0xff]  ;;  %v1382_v60 = vld [vmem:[#allocation2 + $0xa8] sm:$0xff]  ;;  %v1377_v63 = vld [vmem:[#allocation2 + $0x80] sm:$0xff] }
  0x35   : > { %2387 = vmatmul.msk.f32.vlgmr.msrb.gmra.mxu0 %vm429_vm0, %v2966_v29  ;;  %508 = vmatpush.msra.mxu3 %v2971_v30  ;;  %v1380_v62 = vld [vmem:[#allocation2 + $0x98] sm:$0xff]  ;;  %v1367_v11 = vld [vmem:[#allocation2 + $0x30] sm:$0xff] }
  0x36   : > { %759 = vmatpush.msra.mxu0 %v2933_v24  ;;  %803 = vmatpush.msra.mxu2 %v2854_v10 }
  0x37   : > { %509 = vmatpush.msra.mxu3 %v2980_v31  ;;  %2367 = vmatmul.msk.f32.vlgmr.msra.gmra.mxu1 %vm429_vm0, %v2886_v16 }
  0x38   : > { %760 = vmatpush.msra.mxu0 %v2948_v26  ;;  %804 = vmatpush.msra.mxu2 %v2873_v14 }
  0x39   : > { %2355 = vmatmul.msk.f32.vlgmr.msra.gmra.mxu3 %vm429_vm0, %v2928_v23  ;;  %2393 = vmatmul.msk.f32.vlgmr.msra.gmra.mxu2 %vm429_vm0, %v2860_v12 }
  0x3a   : > { %526 = vmatpush.msrb.mxu3 %v2996_v33  ;;  %761 = vmatpush.msra.mxu0 %v2971_v30 }
  0x3b   : > { %889 = vmatpush.msrb.mxu2 %v2897_v18  ;;  %693 = vmatpush.msrb.mxu1 %v3025_v36 }
  0x3c   : > { %527 = vmatpush.msrb.mxu3 %v3008_v34  ;;  %762 = vmatpush.msra.mxu0 %v2980_v31 }
  0x3d   : > { %890 = vmatpush.msrb.mxu2 %v2916_v21  ;;  %2391 = vmatmul.msk.f32.vlgmr.msra.gmra.mxu0 %vm429_vm0, %v2886_v16 }
  0x3e   : > { %528 = vmatpush.msrb.mxu3 %v3016_v35  ;;  %843 = vmatpush.msrb.mxu0 %v2798_v1 }
  0x3f   : > { %891 = vmatpush.msrb.mxu2 %v2941_v25  ;;  %694 = vmatpush.msrb.mxu1 %v3060_v41 }
  0x40   : > { %529 = vmatpush.msrb.mxu3 %v3033_v37  ;;  %844 = vmatpush.msrb.mxu0 %v2810_v3 }
  0x41   : > { %892 = vmatpush.msrb.mxu2 %v2961_v28  ;;  %2356 = vmatmul.msk.f32.vlgmr.msrb.gmra.mxu3 %vm429_vm0, %v2928_v23 }
  0x42   : > { %2398 = vmatmul.msk.f32.vlgmr.msrb.gmra.mxu2 %vm429_vm0, %v3039_v38  ;;  %638 = vmatpush.msra.mxu3 %v3044_v39 }
  0x43   : > { %845 = vmatpush.msrb.mxu0 %v2826_v6  ;;  %975 = vmatpush.msra.mxu2 %v2933_v24 }
  0x44   : > { %639 = vmatpush.msra.mxu3 %v3055_v40  ;;  %695 = vmatpush.msrb.mxu1 %v3084_v44 }
  0x45   : > { %846 = vmatpush.msrb.mxu0 %v2849_v9  ;;  %976 = vmatpush.msra.mxu2 %v2948_v26 }
  0x46   : > { %2395 = vmatmul.msk.f32.vlgmr.msrb.gmra.mxu0 %vm429_vm0, %v2966_v29  ;;  %640 = vmatpush.msra.mxu3 %v3069_v42 }
  0x47   : > { %933 = vmatpush.msra.mxu0 %v2793_v0  ;;  %977 = vmatpush.msra.mxu2 %v2971_v30 }
  0x48   : > { %641 = vmatpush.msra.mxu3 %v3078_v43  ;;  %696 = vmatpush.msrb.mxu1 %v3096_v45 }
  0x49   : > { %2378 = vmatmul.msk.f32.vlgmr.msra.gmra.mxu3 %vm429_vm0, %v2860_v12  ;;  %934 = vmatpush.msra.mxu0 %v2803_v2 }
  0x4a   : > { %737 = vmatpush.msrb.mxu3 %v2865_v13  ;;  %978 = vmatpush.msra.mxu2 %v2980_v31 }
  0x4b   : > { %2402 = vmatmul.msk.f32.vlgmr.msra.gmra.mxu2 %vm429_vm0, %v2860_v12  ;;  %935 = vmatpush.msra.mxu0 %v2820_v5 }
  0x4c   : > { %738 = vmatpush.msrb.mxu3 %v2881_v15  ;;  %1059 = vmatpush.msrb.mxu2 %v2798_v1 }
  0x4d   : > { %2388 = vmatmul.msk.f32.vlgmr.msrb.gmra.mxu1 %vm429_vm0, %v2966_v29  ;;  %936 = vmatpush.msra.mxu0 %v2843_v8 }
  0x4e   : > { %739 = vmatpush.msrb.mxu3 %v2892_v17  ;;  %779 = vmatpush.msra.mxu1 %v2996_v33 }
  0x4f   : > { %1060 = vmatpush.msrb.mxu2 %v2810_v3  ;;  %2400 = vmatmul.msk.f32.vlgmr.msra.gmra.mxu0 %vm429_vm0, %v2886_v16 }
  0x50   : > { %740 = vmatpush.msrb.mxu3 %v2911_v20  ;;  %780 = vmatpush.msra.mxu1 %v3008_v34 }
  0x51   : > { %2390 = vmatmul.msk.f32.vlgmr.msrb.gmra.mxu3 %vm429_vm0, %v2928_v23  ;;  %1017 = vmatpush.msrb.mxu0 %v2815_v4  ;;  %v1514_v23 = vld [vmem:[#allocation2 + $0x1f8] sm:$0xff] }
  0x52   : > { %821 = vmatpush.msra.mxu3 %v2904_v19  ;;  %1061 = vmatpush.msrb.mxu2 %v2826_v6 }
  0x53   : > { %781 = vmatpush.msra.mxu1 %v3016_v35  ;;  %1018 = vmatpush.msrb.mxu0 %v2831_v7 }
  0x54   : > { %822 = vmatpush.msra.mxu3 %v2922_v22  ;;  %1062 = vmatpush.msrb.mxu2 %v2849_v9 }
  0x55   : > { %782 = vmatpush.msra.mxu1 %v3033_v37  ;;  %2406 = vmatmul.msk.f32.vlgmr.msrb.gmra.mxu2 %vm429_vm0, %v3039_v38 }
  0x56   : > { %823 = vmatpush.msra.mxu3 %v2953_v27  ;;  %1019 = vmatpush.msrb.mxu0 %v2854_v10 }
  0x57   : > { %1149 = vmatpush.msra.mxu2 %v2793_v0  ;;  %2392 = vmatmul.msk.f32.vlgmr.msra.gmra.mxu1 %vm429_vm0, %v2886_v16  ;;  %v1378_v0 = vld [vmem:[#allocation2 + $0x88] sm:$0xff] }
  0x58   : > { %824 = vmatpush.msra.mxu3 %v2985_v32  ;;  %863 = vmatpush.msrb.mxu1 %v3044_v39 }
  0x59   : > { %2394 = vmatmul.msk.f32.vlgmr.msra.gmra.mxu3 %vm429_vm0, %v2860_v12  ;;  %1020 = vmatpush.msrb.mxu0 %v2873_v14 }
  0x5a   : > { %909 = vmatpush.msrb.mxu3 %v3025_v36  ;;  %1150 = vmatpush.msra.mxu2 %v2803_v2  ;;  %v1376_v2 = vld [vmem:[#allocation2 + $0x78] sm:$0xff] }
  0x5b   : > { %2404 = vmatmul.msk.f32.vlgmr.msrb.gmra.mxu0 %vm429_vm0, %v2966_v29  ;;  %864 = vmatpush.msrb.mxu1 %v3055_v40 }
  0x5c   : > { %910 = vmatpush.msrb.mxu3 %v3060_v41  ;;  %1105 = vmatpush.msra.mxu0 %v2897_v18 }
  0x5d   : > { %1151 = vmatpush.msra.mxu2 %v2820_v5  ;;  %865 = vmatpush.msrb.mxu1 %v3069_v42  ;;  %v1374_v5 = vld [vmem:[#allocation2 + $0x68] sm:$0xff] }
  0x5e   : > { %911 = vmatpush.msrb.mxu3 %v3084_v44  ;;  %1106 = vmatpush.msra.mxu0 %v2916_v21 }
  0x5f   : > { %1152 = vmatpush.msra.mxu2 %v2843_v8  ;;  %866 = vmatpush.msrb.mxu1 %v3078_v43  ;;  %v1369_v8 = vld [vmem:[#allocation2 + $0x40] sm:$0xff] }
  0x60   : > { %2411 = vmatmul.msk.f32.vlgmr.msra.gmra.mxu2 %vm429_vm0, %v2860_v12  ;;  %912 = vmatpush.msrb.mxu3 %v3096_v45 }
  0x61   : > { %1107 = vmatpush.msra.mxu0 %v2941_v25  ;;  %1233 = vmatpush.msrb.mxu2 %v2815_v4  ;;  %v1373_v4 = vld [vmem:[#allocation2 + $0x60] sm:$0xff] }
  0x62   : > { %2396 = vmatmul.msk.f32.vlgmr.msrb.gmra.mxu1 %vm429_vm0, %v2966_v29  ;;  %2399 = vmatmul.msk.f32.vlgmr.msrb.gmra.mxu3 %vm429_vm0, %v3039_v38 }
  0x63   : > { %953 = vmatpush.msra.mxu1 %v2865_v13  ;;  %995 = vmatpush.msra.mxu3 %v2996_v33 }
  0x64   : > { %1108 = vmatpush.msra.mxu0 %v2961_v28  ;;  %1234 = vmatpush.msrb.mxu2 %v2831_v7  ;;  %v1372_v7 = vld [vmem:[#allocation2 + $0x58] sm:$0xff] }
  0x65   : > { %2409 = vmatmul.msk.f32.vlgmr.msra.gmra.mxu0 %vm429_vm0, %v3162_v46  ;;  %954 = vmatpush.msra.mxu1 %v2881_v15 }
  0x66   : > { %996 = vmatpush.msra.mxu3 %v3008_v34  ;;  %1191 = vmatpush.msrb.mxu0 %v2933_v24 }
  0x67   : > { %1235 = vmatpush.msrb.mxu2 %v2854_v10  ;;  %955 = vmatpush.msra.mxu1 %v2892_v17 }
  0x68   : > { %997 = vmatpush.msra.mxu3 %v3016_v35  ;;  %1192 = vmatpush.msrb.mxu0 %v2948_v26  ;;  %v1511_v26 = vld [vmem:[#allocation2 + $0x1e0] sm:$0xff] }
  0x69   : > { %1236 = vmatpush.msrb.mxu2 %v2873_v14  ;;  %956 = vmatpush.msra.mxu1 %v2911_v20  ;;  %v1365_v14 = vld [vmem:[#allocation2 + $0x20] sm:$0xff] }
  0x6a   : > { %2415 = vmatmul.msk.f32.vlgmr.msrb.gmra.mxu2 %vm429_vm0, %v3039_v38  ;;  %998 = vmatpush.msra.mxu3 %v3033_v37 }
  0x6b   : > { %1193 = vmatpush.msrb.mxu0 %v2971_v30  ;;  %1321 = vmatpush.msra.mxu2 %v2897_v18  ;;  %v1364_v18 = vld [vmem:[#allocation2 + $0x18] sm:$0xff] }
  0x6c   : > { %2401 = vmatmul.msk.f32.vlgmr.msra.gmra.mxu1 %vm429_vm0, %v2886_v16  ;;  %2403 = vmatmul.msk.f32.vlgmr.msra.gmra.mxu3 %vm429_vm0, %v2860_v12 }
  0x6d   : > { %1037 = vmatpush.msrb.mxu1 %v2904_v19  ;;  %1079 = vmatpush.msrb.mxu3 %v3044_v39 }
  0x6e   : > { %1194 = vmatpush.msrb.mxu0 %v2980_v31  ;;  %1322 = vmatpush.msra.mxu2 %v2916_v21  ;;  %v1507_v31 = vld [vmem:[#allocation2 + $0x1c0] sm:$0xff] }
  0x6f   : > { %2413 = vmatmul.msk.f32.vlgmr.msrb.gmra.mxu0 %vm429_vm0, %v2966_v29  ;;  %1038 = vmatpush.msrb.mxu1 %v2922_v22 }
  0x70   : > { %1080 = vmatpush.msrb.mxu3 %v3055_v40  ;;  %1275 = vmatpush.msra.mxu0 %v2798_v1  ;;  %v1375_v1 = vld [vmem:[#allocation2 + $0x70] sm:$0xff] }
  0x71   : > { %1323 = vmatpush.msra.mxu2 %v2941_v25  ;;  %1039 = vmatpush.msrb.mxu1 %v2953_v27 }
  0x72   : > { %1081 = vmatpush.msrb.mxu3 %v3069_v42  ;;  %1276 = vmatpush.msra.mxu0 %v2810_v3 }
  0x73   : > { %1324 = vmatpush.msra.mxu2 %v2961_v28  ;;  %1040 = vmatpush.msrb.mxu1 %v2985_v32  ;;  %v1509_v28 = vld [vmem:[#allocation2 + $0x1d0] sm:$0xff] }
  0x74   : > { %2420 = vmatmul.msk.f32.vlgmr.msra.gmra.mxu2 %vm429_vm0, %v2419_v47  ;;  %1082 = vmatpush.msrb.mxu3 %v3078_v43 }
  0x75   : > { %1277 = vmatpush.msra.mxu0 %v2826_v6  ;;  %2405 = vmatmul.msk.f32.vlgmr.msrb.gmra.mxu1 %vm429_vm0, %v2966_v29  ;;  %v1371_v6 = vld [vmem:[#allocation2 + $0x50] sm:$0xff] }
  0x76   : > { %2407 = vmatmul.msk.f32.vlgmr.msrb.gmra.mxu3 %vm429_vm0, %v3039_v38  ;;  %1125 = vmatpush.msra.mxu1 %v3025_v36 }
  0x77   : > { %1169 = vmatpush.msra.mxu3 %v2865_v13  ;;  %1278 = vmatpush.msra.mxu0 %v2849_v9  ;;  %v1370_v9 = vld [vmem:[#allocation2 + $0x48] sm:$0xff] }
  0x78   : > { %2417 = vmatmul.msk.f32.vlgmr.msra.gmra.mxu0 %vm429_vm0, %v3162_v46  ;;  %1126 = vmatpush.msra.mxu1 %v3060_v41 }
  0x79   : > { %1170 = vmatpush.msra.mxu3 %v2881_v15  ;;  %1393 = vmatpush.msrb.mxu0 %v1391_v48  ;;  %v1366_v15 = vld [vmem:[#allocation2 + $0x28] sm:$0xff] }
  0x7a   : > { %1127 = vmatpush.msra.mxu1 %v3084_v44  ;;  %1440 = vmatpush.msrb.mxu2 %v1391_v48  ;;  %v1497_v48 = vld [vmem:[#allocation2 + $0x170] sm:$0xff] }
  0x7b   : > { %1171 = vmatpush.msra.mxu3 %v2892_v17  ;;  %1394 = vmatpush.msrb.mxu0 %v1389_v50  ;;  %v1363_v17 = vld [vmem:[#allocation2 + $0x10] sm:$0xff] }
  0x7c   : > { %1128 = vmatpush.msra.mxu1 %v3096_v45  ;;  %1441 = vmatpush.msrb.mxu2 %v1389_v50 }
  0x7d   : > { %1172 = vmatpush.msra.mxu3 %v2911_v20  ;;  %2410 = vmatmul.msk.f32.vlgmr.msra.gmra.mxu1 %vm429_vm0, %v3162_v46  ;;  %v1362_v20 = vld [vmem:[#allocation2 + $0x8] sm:$0xff] }
  0x7e   : > { %2412 = vmatmul.msk.f32.vlgmr.msra.gmra.mxu3 %vm429_vm0, %v2860_v12  ;;  %1211 = vmatpush.msrb.mxu1 %v2996_v33  ;;  %v1368_v12 = vld [vmem:[#allocation2 + $0x38] sm:$0xff] }
  0x7f   : > { %1253 = vmatpush.msrb.mxu3 %v2904_v19  ;;  %1395 = vmatpush.msrb.mxu0 %v1387_v52  ;;  %v1361_v19 = vld [vmem:[#allocation2] sm:$0xff] }
  0x80   : > { %1212 = vmatpush.msrb.mxu1 %v3008_v34  ;;  %1442 = vmatpush.msrb.mxu2 %v1387_v52  ;;  %v1505_v34 = vld [vmem:[#allocation2 + $0x1b0] sm:$0xff] }
  0x81   : > { %1254 = vmatpush.msrb.mxu3 %v2922_v22  ;;  %1396 = vmatpush.msrb.mxu0 %v1385_v54  ;;  %v1513_v22 = vld [vmem:[#allocation2 + $0x1f0] sm:$0xff] }
  0x82   : > { %1213 = vmatpush.msrb.mxu1 %v3016_v35  ;;  %1443 = vmatpush.msrb.mxu2 %v1385_v54  ;;  %v1506_v35 = vld [vmem:[#allocation2 + $0x1b8] sm:$0xff]  ;;  %v1495_v54 = vld [vmem:[#allocation2 + $0x160] sm:$0xff] }
  0x83   : > { %1255 = vmatpush.msrb.mxu3 %v2953_v27  ;;  %1397 = vmatpush.msrb.mxu0 %v1383_v57  ;;  %v1512_v27 = vld [vmem:[#allocation2 + $0x1e8] sm:$0xff] }
  0x84   : > { %1214 = vmatpush.msrb.mxu1 %v3033_v37  ;;  %1444 = vmatpush.msrb.mxu2 %v1383_v57  ;;  %v418_v37 = vld [vmem:[%s3824_s2] sm:$0x3] }
  0x85   : > { %1256 = vmatpush.msrb.mxu3 %v2985_v32  ;;  %2414 = vmatmul.msk.f32.vlgmr.msrb.gmra.mxu1 %vm429_vm0, %v2966_v29  ;;  %v1510_v29 = vld [vmem:[#allocation2 + $0x1d8] sm:$0xff]  ;;  %v1508_v32 = vld [vmem:[#allocation2 + $0x1c8] sm:$0xff] }
  0x86   : > { %2416 = vmatmul.msk.f32.vlgmr.msrb.gmra.mxu3 %vm429_vm0, %v3039_v38  ;;  %1295 = vmatpush.msra.mxu1 %v3044_v39  ;;  %v1503_v38 = vld [vmem:[#allocation2 + $0x1a0] sm:$0xff]  ;;  %v1504_v39 = vld [vmem:[#allocation2 + $0x1a8] sm:$0xff] }
  0x87   : > { %1341 = vmatpush.msra.mxu3 %v3025_v36  ;;  %1398 = vmatpush.msrb.mxu0 %v1381_v59 }
  0x88   : > { %1296 = vmatpush.msra.mxu1 %v3055_v40  ;;  %1445 = vmatpush.msrb.mxu2 %v1381_v59  ;;  %v1493_v59 = vld [vmem:[#allocation2 + $0x150] sm:$0xff] }
  0x89   : > { %1342 = vmatpush.msra.mxu3 %v3060_v41  ;;  %1399 = vmatpush.msrb.mxu0 %v1379_v61  ;;  %v1501_v41 = vld [vmem:[#allocation2 + $0x190] sm:$0xff] }
  0x8a   : > { %1297 = vmatpush.msra.mxu1 %v3069_v42  ;;  %1446 = vmatpush.msrb.mxu2 %v1379_v61  ;;  %v1502_v42 = vld [vmem:[#allocation2 + $0x198] sm:$0xff] }
  0x8b   : > { %1343 = vmatpush.msra.mxu3 %v3084_v44  ;;  %1400 = vmatpush.msrb.mxu0 %v1377_v63  ;;  %v1499_v44 = vld [vmem:[#allocation2 + $0x180] sm:$0xff] }
  0x8c   : > { %1298 = vmatpush.msra.mxu1 %v3078_v43  ;;  %1447 = vmatpush.msrb.mxu2 %v1377_v63  ;;  %v3274_v43 = vperm.slane %v418_v37, 0  ;;  %v1492_v63 = vld [vmem:[#allocation2 + $0x148] sm:$0xff] }
  0x8d   : > { %1344 = vmatpush.msra.mxu3 %v3096_v45  ;;  %2418 = vmatmul.msk.f32.vlgmr.msra.gmra.mxu1 %vm429_vm0, %v3162_v46  ;;  %v1500_v45 = vld [vmem:[#allocation2 + $0x188] sm:$0xff] }
  0x8e   : > { %2421 = vmatmul.msk.f32.vlgmr.msra.gmra.mxu3 %vm429_vm0, %v2419_v47  ;;  %1413 = vmatpush.msrb.mxu1 %v1392_v49 }
  0x8f   : > { %1460 = vmatpush.msrb.mxu3 %v1392_v49  ;;  %1401 = vmatpush.msrb.mxu0 %v1375_v1  ;;  %v1498_v49 = vld [vmem:[#allocation2 + $0x178] sm:$0xff] }
  0x90   : > { %1414 = vmatpush.msrb.mxu1 %v1390_v51  ;;  %1448 = vmatpush.msrb.mxu2 %v1375_v1 }
  0x91   : > { %1461 = vmatpush.msrb.mxu3 %v1390_v51  ;;  %1402 = vmatpush.msrb.mxu0 %v1373_v4  ;;  %v3279_v51 = vperm.slane %v418_v37, 1 }
  0x92   : > { %1415 = vmatpush.msrb.mxu1 %v1388_v53  ;;  %1449 = vmatpush.msrb.mxu2 %v1373_v4 }
  0x93   : > { %1462 = vmatpush.msrb.mxu3 %v1388_v53  ;;  %1403 = vmatpush.msrb.mxu0 %v1371_v6 }
  0x94   : > { %1416 = vmatpush.msrb.mxu1 %v1386_v55  ;;  %1450 = vmatpush.msrb.mxu2 %v1371_v6  ;;  %v1490_v6 = vld [vmem:[#allocation2 + $0x138] sm:$0xff] }
  0x95   : > { %1463 = vmatpush.msrb.mxu3 %v1386_v55  ;;  %1404 = vmatpush.msrb.mxu0 %v1369_v8  ;;  %v1496_v55 = vld [vmem:[#allocation2 + $0x168] sm:$0xff] }
  0x96   : > { %1417 = vmatpush.msrb.mxu1 %v1384_v58  ;;  %1451 = vmatpush.msrb.mxu2 %v1369_v8  ;;  %v1487_v8 = vld [vmem:[#allocation2 + $0x120] sm:$0xff] }
  0x97   : > { %1464 = vmatpush.msrb.mxu3 %v1384_v58  ;;  %1405 = vmatpush.msrb.mxu0 %v1367_v11 }
  0x98   : > { %1418 = vmatpush.msrb.mxu1 %v1382_v60  ;;  %1452 = vmatpush.msrb.mxu2 %v1367_v11 }
  0x99   : > { %1465 = vmatpush.msrb.mxu3 %v1382_v60  ;;  %1406 = vmatpush.msrb.mxu0 %v1365_v14  ;;  %v1494_v60 = vld [vmem:[#allocation2 + $0x158] sm:$0xff] }
  0x9a   : > { %1419 = vmatpush.msrb.mxu1 %v1380_v62  ;;  %1453 = vmatpush.msrb.mxu2 %v1365_v14 }
  0x9b   : > { %1466 = vmatpush.msrb.mxu3 %v1380_v62  ;;  %1407 = vmatpush.msrb.mxu0 %v1363_v17  ;;  %v1491_v62 = vld [vmem:[#allocation2 + $0x140] sm:$0xff] }
  0x9c   : > { %1420 = vmatpush.msrb.mxu1 %v1378_v0  ;;  %1454 = vmatpush.msrb.mxu2 %v1363_v17  ;;  %v1486_v17 = vld [vmem:[#allocation2 + $0x118] sm:$0xff] }
  0x9d   : > { %1467 = vmatpush.msrb.mxu3 %v1378_v0  ;;  %1408 = vmatpush.msrb.mxu0 %v1361_v19 }
  0x9e   : > { %1421 = vmatpush.msrb.mxu1 %v1376_v2  ;;  %1455 = vmatpush.msrb.mxu2 %v1361_v19 }
  0x9f   : > { %1468 = vmatpush.msrb.mxu3 %v1376_v2  ;;  %1515 = vmatpush.msra.mxu0 %v1513_v22 }
  0xa0   : > { %1422 = vmatpush.msrb.mxu1 %v1374_v5  ;;  %1560 = vmatpush.msra.mxu2 %v1513_v22  ;;  %v1483_v22 = vld [vmem:[#allocation2 + $0x100] sm:$0xff] }
  0xa1   : > { %1469 = vmatpush.msrb.mxu3 %v1374_v5  ;;  %1516 = vmatpush.msra.mxu0 %v1511_v26  ;;  %v1489_v5 = vld [vmem:[#allocation2 + $0x130] sm:$0xff] }
  0xa2   : > { %1423 = vmatpush.msrb.mxu1 %v1372_v7  ;;  %1561 = vmatpush.msra.mxu2 %v1511_v26 }
  0xa3   : > { %1470 = vmatpush.msrb.mxu3 %v1372_v7  ;;  %1517 = vmatpush.msra.mxu0 %v1509_v28 }
  0xa4   : > { %1424 = vmatpush.msrb.mxu1 %v1370_v9  ;;  %1562 = vmatpush.msra.mxu2 %v1509_v28 }
  0xa5   : > { %1471 = vmatpush.msrb.mxu3 %v1370_v9  ;;  %1518 = vmatpush.msra.mxu0 %v1507_v31  ;;  %v1488_v9 = vld [vmem:[#allocation2 + $0x128] sm:$0xff] }
  0xa6   : > { %1425 = vmatpush.msrb.mxu1 %v1368_v12  ;;  %1563 = vmatpush.msra.mxu2 %v1507_v31 }
  0xa7   : > { %1472 = vmatpush.msrb.mxu3 %v1368_v12  ;;  %1519 = vmatpush.msra.mxu0 %v1505_v34 }
  0xa8   : > { %v3255_v10 = vpop.f32.mrf.mxu0  ;;  %1426 = vmatpush.msrb.mxu1 %v1366_v15  ;;  %1564 = vmatpush.msra.mxu2 %v1505_v34 }
  0xa9   : > { %1473 = vmatpush.msrb.mxu3 %v1366_v15  ;;  %1520 = vmatpush.msra.mxu0 %v1503_v38  ;;  %v1485_v15 = vld [vmem:[#allocation2 + $0x110] sm:$0xff] }
  0xaa   : > { %1427 = vmatpush.msrb.mxu1 %v1364_v18  ;;  %1565 = vmatpush.msra.mxu2 %v1503_v38 }
  0xab   : > { %v3251_v56 = vpop.f32.mrf.mxu3  ;;  %1474 = vmatpush.msrb.mxu3 %v1364_v18  ;;  %1521 = vmatpush.msra.mxu0 %v1501_v41 }
  0xac   : > { %v3259_v16 = vpop.f32.mrf.mxu2  ;;  %1428 = vmatpush.msrb.mxu1 %v1362_v20  ;;  %1566 = vmatpush.msra.mxu2 %v1501_v41  ;;  %v478_v50 = vadd.f32 %v3274_v43, %v3251_v56 }
  0xad   : > { %1475 = vmatpush.msrb.mxu3 %v1362_v20  ;;  %1522 = vmatpush.msra.mxu0 %v1499_v44 }
  0xae   : > { %1535 = vmatpush.msra.mxu1 %v1514_v23  ;;  %1567 = vmatpush.msra.mxu2 %v1499_v44  ;;  %v3300_v44 = vld [vmem:[#allocation2 + $0x2f0] sm:$0xff] }
  0xaf   : > { %1580 = vmatpush.msra.mxu3 %v1514_v23  ;;  %1523 = vmatpush.msra.mxu0 %v1497_v48  ;;  %v1484_v23 = vld [vmem:[#allocation2 + $0x108] sm:$0xff] }
  0xb0   : > { %1536 = vmatpush.msra.mxu1 %v1512_v27  ;;  %1568 = vmatpush.msra.mxu2 %v1497_v48 }
  0xb1   : > { %1581 = vmatpush.msra.mxu3 %v1512_v27  ;;  %1524 = vmatpush.msra.mxu0 %v1495_v54 }
  0xb2   : > { %v3263_v24 = vpop.f32.mrf.mxu0  ;;  %1537 = vmatpush.msra.mxu1 %v1510_v29  ;;  %1569 = vmatpush.msra.mxu2 %v1495_v54  ;;  %v3320_v54 = vld [vmem:[#allocation2 + $0x2c8] sm:$0xff] }
  0xb3   : > { %v3253_v3 = vpop.f32.mrf.mxu3  ;;  %1582 = vmatpush.msra.mxu3 %v1510_v29  ;;  %1525 = vmatpush.msra.mxu0 %v1493_v59 }
  0xb4   : > { %v3261_v21 = vpop.f32.mrf.mxu1  ;;  %v722_v30 = vpop.f32.mrf.mxu2  ;;  %1538 = vmatpush.msra.mxu1 %v1508_v32  ;;  %v479_v56 = vadd.f32 %v3279_v51, %v3253_v3  ;;  %1570 = vmatpush.msra.mxu2 %v1493_v59 }
  0xb5   : > { %1583 = vmatpush.msra.mxu3 %v1508_v32  ;;  %v745_v47 = vadd.f32 %v722_v30, %v3274_v43  ;;  %1526 = vmatpush.msra.mxu0 %v1491_v62 }
  0xb6   : > { %1539 = vmatpush.msra.mxu1 %v1506_v35  ;;  %1571 = vmatpush.msra.mxu2 %v1491_v62 }
  0xb7   : > { %1584 = vmatpush.msra.mxu3 %v1506_v35  ;;  %1527 = vmatpush.msra.mxu0 %v1489_v5 }
  0xb8   : > { %1540 = vmatpush.msra.mxu1 %v1504_v39  ;;  %1572 = vmatpush.msra.mxu2 %v1489_v5 }
  0xb9   : > { %1585 = vmatpush.msra.mxu3 %v1504_v39  ;;  %1528 = vmatpush.msra.mxu0 %v1487_v8 }
  0xba   : > { %v764_v40 = vpop.f32.mrf.mxu0  ;;  %1541 = vmatpush.msra.mxu1 %v1502_v42  ;;  %1573 = vmatpush.msra.mxu2 %v1487_v8  ;;  %v3353_v8 = vld [vmem:[#allocation2 + $0x270] sm:$0xff] }
  0xbb   : > { %1586 = vmatpush.msra.mxu3 %v1502_v42  ;;  %v787_v58 = vadd.f32 %v764_v40, %v745_v47  ;;  %1529 = vmatpush.msra.mxu0 %v1485_v15  ;;  %v3308_v47 = vld [vmem:[#allocation2 + $0x2e8] sm:$0xff] }
  0xbc   : > { %v3257_v13 = vpop.f32.mrf.mxu3  ;;  %v806_v46 = vpop.f32.mrf.mxu2  ;;  %1542 = vmatpush.msra.mxu1 %v1500_v45  ;;  %1574 = vmatpush.msra.mxu2 %v1485_v15 }
  0xbd   : > { %1587 = vmatpush.msra.mxu3 %v1500_v45  ;;  %v534_v57 = vadd.f32 %v3257_v13, %v478_v50  ;;  %v829_v2 = vadd.f32 %v806_v46, %v787_v58  ;;  %1530 = vmatpush.msra.mxu0 %v1483_v22  ;;  %v3302_v45 = vld [vmem:[#allocation2 + $0x2f8] sm:$0xff]  ;;  %v3306_v46 = vld [vmem:[#allocation2 + $0x2e0] sm:$0xff] }
  0xbe   : > { %1543 = vmatpush.msra.mxu1 %v1498_v49  ;;  %1575 = vmatpush.msra.mxu2 %v1483_v22  ;;  %v3314_v50 = vld [vmem:[#allocation2 + $0x2d8] sm:$0xff] }
  0xbf   : > { %1588 = vmatpush.msra.mxu3 %v1498_v49  ;;  %v590_v0 = vadd.f32 %v3255_v10, %v534_v57  ;;  %v3312_v49 = vld [vmem:[#allocation2 + $0x2d0] sm:$0xff]  ;;  %v3328_v58 = vld [vmem:[#allocation2 + $0x2b8] sm:$0xff] }
  0xc0   : > { %1544 = vmatpush.msra.mxu1 %v1496_v55  ;;  %v3326_v57 = vld [vmem:[#allocation2 + $0x2b0] sm:$0xff] }
  0xc1   : > { %1589 = vmatpush.msra.mxu3 %v1496_v55  ;;  %v646_v10 = vadd.f32 %v3259_v16, %v590_v0  ;;  %v3342_v0 = vld [vmem:[#allocation2 + $0x298] sm:$0xff] }
  0xc2   : > { %1545 = vmatpush.msra.mxu1 %v1494_v60 }
  0xc3   : > { %v848_v61 = vpop.f32.mrf.mxu0  ;;  %1590 = vmatpush.msra.mxu3 %v1494_v60  ;;  %v701_v16 = vadd.f32 %v3263_v24, %v646_v10 }
  0xc4   : > { %v3265_v25 = vpop.f32.mrf.mxu3  ;;  %1546 = vmatpush.msra.mxu1 %v1492_v63  ;;  %v871_v12 = vadd.f32 %v848_v61, %v829_v2  ;;  %v3335_v61 = vld [vmem:[#allocation2 + $0x2a8] sm:$0xff] }
  0xc5   : > { %v535_v1 = vadd.f32 %v3265_v25, %v479_v56  ;;  %v894_v3 = vpop.f32.mrf.mxu2  ;;  %1591 = vmatpush.msra.mxu3 %v1492_v63  ;;  %2489 = vtanh.f32 %v701_v16  ;;  %v3333_v56 = vld [vmem:[#allocation2 + $0x2a0] sm:$0xff]  ;;  %v3340_v63 = vld [vmem:[#allocation2 + $0x290] sm:$0xff] }
  0xc6   : > { %1547 = vmatpush.msra.mxu1 %v1490_v6  ;;  %v3374_v16 = vld [vmem:[#allocation2 + $0x240] sm:$0xff] }
  0xc7   : > { %v591_v11 = vadd.f32 %v3261_v21, %v535_v1  ;;  %1592 = vmatpush.msra.mxu3 %v1490_v6  ;;  %v917_v21 = vadd.f32 %v894_v3, %v871_v12  ;;  %v3347_v6 = vld [vmem:[#allocation2 + $0x280] sm:$0xff] }
  0xc8   : > { %1548 = vmatpush.msra.mxu1 %v1488_v9  ;;  %v3359_v12 = vld [vmem:[#allocation2 + $0x260] sm:$0xff] }
  0xc9   : > { %1593 = vmatpush.msra.mxu3 %v1488_v9  ;;  %2491 = vtanh.f32 %v917_v21  ;;  %v3355_v9 = vld [vmem:[#allocation2 + $0x278] sm:$0xff] }
  0xca   : > { %v3267_v33 = vpop.f32.mrf.mxu1  ;;  %1549 = vmatpush.msra.mxu1 %v1486_v17 }
  0xcb   : > { %1594 = vmatpush.msra.mxu3 %v1486_v17  ;;  %v2490_v24 = vpop.eup %2489 }
  0xcc   : > { %v3269_v36 = vpop.f32.mrf.mxu3  ;;  %v938_v19 = vpop.f32.mrf.mxu0  ;;  %1550 = vmatpush.msra.mxu1 %v1484_v23 }
  0xcd   : > { %v647_v18 = vadd.f32 %v3269_v36, %v591_v11  ;;  %1595 = vmatpush.msra.mxu3 %v1484_v23  ;;  %v961_v59 = vadd.f32 %v938_v19, %v3274_v43  ;;  %v3368_v19 = vld [vmem:[#allocation2 + $0x258] sm:$0xff] }
  0xce   : > { %v980_v26 = vpop.f32.mrf.mxu2 }
  0xcf   : > { %v702_v25 = vadd.f32 %v3267_v33, %v647_v18  ;;  %v2492_v32 = vpop.eup %2491  ;;  %v1003_v1 = vadd.f32 %v980_v26, %v961_v59  ;;  %v3366_v18 = vld [vmem:[#allocation2 + $0x250] sm:$0xff] }
  0xd0   : > { %v1353_v37 = vadd.f32 %v2492_v32, %v2490_v24  ;;  %v3387_v32 = vld [vmem:[#allocation2 + $0x220] sm:$0xff] }
  0xd1   : > { %2493 = vtanh.f32 %v702_v25 }
  0xd4   : > { %v742_v52 = vpop.f32.mrf.mxu3  ;;  %v784_v53 = vpop.f32.mrf.mxu1 }
  0xd5   : > { %v746_v4 = vadd.f32 %v742_v52, %v3279_v51 }
  0xd7   : > { %v788_v13 = vadd.f32 %v784_v53, %v746_v4  ;;  %v2494_v34 = vpop.eup %2493  ;;  %v3318_v53 = vld [vmem:[#allocation2 + $0x2c0] sm:$0xff] }
  0xd8   : > { %v1022_v31 = vpop.f32.mrf.mxu0  ;;  %v3292_v35 = vpop.f32.mrf.mxu2 }
  0xd9   : > { %v1045_v10 = vadd.f32 %v1022_v31, %v1003_v1 }
  0xdc   : > { %v826_v7 = vpop.f32.mrf.mxu3 }
  0xdd   : > { %v830_v20 = vadd.f32 %v826_v7, %v788_v13  ;;  %v3361_v13 = vld [vmem:[#allocation2 + $0x268] sm:$0xff] }
  0xdf   : > { %v868_v14 = vpop.f32.mrf.mxu1 }
  0xe0   : > { %v872_v27 = vadd.f32 %v868_v14, %v830_v20  ;;  %v1087_v20 = vadd.f32 %v3292_v35, %v1045_v10  ;;  %v3422_v10 = vld [vmem:[#allocation2 + $0x3e8] sm:$0xff] }
  0xe2   : > { %v3296_v41 = vpop.f32.mrf.mxu0 }
  0xe3   : > { %v1154_v48 = vpop.f32.mrf.mxu2  ;;  %v1133_v31 = vadd.f32 %v3296_v41, %v1087_v20  ;;  %v3402_v41 = vld [vmem:[#allocation2 + $0x208] sm:$0xff]  ;;  %v3527_v20 = vld [vmem:[#allocation2 + $0x318] sm:$0xff] }
  0xe4   : > { %v1177_v62 = vadd.f32 %v1154_v48, %v3274_v43  ;;  %v3349_v43 = vld [vmem:[#allocation2 + $0x288] sm:$0xff] }
  0xe5   : > { %v914_v28 = vpop.f32.mrf.mxu3 }
  0xe6   : > { %v918_v29 = vadd.f32 %v914_v28, %v872_v27  ;;  %v3380_v28 = vld [vmem:[#allocation2 + $0x230] sm:$0xff] }
  0xe8   : > { %2495 = vtanh.f32 %v918_v29  ;;  %v3382_v29 = vld [vmem:[#allocation2 + $0x238] sm:$0xff] }
  0xe9   : > { %v958_v30 = vpop.f32.mrf.mxu1  ;;  %2497 = vtanh.f32 %v1133_v31  ;;  %v3574_v31 = vld [vmem:[#allocation2 + $0x4b0] sm:$0xff] }
  0xea   : > { %v962_v2 = vadd.f32 %v958_v30, %v3279_v51 }
  0xec   : > { %v1196_v60 = vpop.f32.mrf.mxu0 }
  0xed   : > { %v1238_v4 = vpop.f32.mrf.mxu2  ;;  %v1219_v3 = vadd.f32 %v1196_v60, %v1177_v62 }
  0xee   : > { %v2496_v36 = vpop.eup %2495 }
  0xef   : > { %v1354_v33 = vadd.f32 %v2496_v36, %v2494_v34  ;;  %v1000_v38 = vpop.f32.mrf.mxu3  ;;  %v1261_v14 = vadd.f32 %v1238_v4, %v1219_v3  ;;  %v3389_v34 = vld [vmem:[#allocation2 + $0x228] sm:$0xff]  ;;  %v3414_v3 = vld [vmem:[#allocation2 + $0x3f8] sm:$0xff] }
  0xf0   : > { %v1004_v11 = vadd.f32 %v1000_v38, %v962_v2 }
  0xf1   : > { %v1357_v39 = vadd.f32 %v1354_v33, %v1353_v37  ;;  %v3394_v37 = vld [vmem:[#allocation2 + $0x210] sm:$0xff]  ;;  %v3396_v33 = vld [vmem:[#allocation2 + $0x218] sm:$0xff] }
  0xf2   : > { %v3294_v40 = vpop.f32.mrf.mxu1 }
  0xf3   : > { %v3298_v42 = vmul.f32 0.25, %v1357_v39  ;;  %v1046_v22 = vadd.f32 %v3294_v40, %v1004_v11  ;;  %v3400_v40 = vld [vmem:[#allocation2 + $0x200] sm:$0xff]  ;;  %v3428_v11 = vld [vmem:[#allocation2 + $0x3d0] sm:$0xff] }
  0xf5   : > { %1409 = vmatmul.f32.vlgmr.msrb.gmra.mxu0 %v3298_v42  ;;  %1429 = vmatmul.f32.vlgmr.msrb.gmra.mxu1 %v3298_v42  ;;  %v1280_v17 = vpop.f32.mrf.mxu0 }
  0xf6   : > { %1635 = vmatpush.msrb.mxu0 %v3300_v44  ;;  %1655 = vmatpush.msrb.mxu1 %v3302_v45  ;;  %v1303_v21 = vadd.f32 %v1280_v17, %v1261_v14  ;;  %v3430_v14 = vld [vmem:[#allocation2 + $0x3d8] sm:$0xff]  ;;  %v3517_v17 = vld [vmem:[#allocation2 + $0x320] sm:$0xff] }
  0xf7   : > { %v1326_v26 = vpop.f32.mrf.mxu2 }
  0xf8   : > { %1636 = vmatpush.msrb.mxu0 %v3306_v46  ;;  %1656 = vmatpush.msrb.mxu1 %v3308_v47  ;;  %v1349_v35 = vadd.f32 %v1326_v26, %v1303_v21  ;;  %v3546_v21 = vld [vmem:[#allocation2 + $0x4f8] sm:$0xff]  ;;  %v3552_v26 = vld [vmem:[#allocation2 + $0x4e8] sm:$0xff] }
  0xf9   : > { %v1084_v52 = vpop.f32.mrf.mxu3 }
  0xfa   : > { %v3322_v55 = vpop.f32.mrf.mxu1  ;;  %1637 = vmatpush.msrb.mxu0 %v3312_v49  ;;  %1657 = vmatpush.msrb.mxu1 %v3314_v50  ;;  %v1088_v27 = vadd.f32 %v1084_v52, %v1046_v22  ;;  %2499 = vtanh.f32 %v1349_v35  ;;  %v2498_v52 = vpop.eup %2497  ;;  %v3533_v22 = vld [vmem:[#allocation2 + $0x300] sm:$0xff]  ;;  %v3590_v35 = vld [vmem:[#allocation2 + $0x490] sm:$0xff] }
  0xfc   : > { %1638 = vmatpush.msrb.mxu0 %v3318_v53  ;;  %1658 = vmatpush.msrb.mxu1 %v3320_v54  ;;  %v1134_v36 = vadd.f32 %v3322_v55, %v1088_v27  ;;  %v3558_v27 = vld [vmem:[#allocation2 + $0x4d0] sm:$0xff] }
  0xfe   : > { %1639 = vmatpush.msrb.mxu0 %v3326_v57  ;;  %1659 = vmatpush.msrb.mxu1 %v3328_v58  ;;  %2501 = vtanh.f32 %v1134_v36  ;;  %v3592_v36 = vld [vmem:[#allocation2 + $0x498] sm:$0xff] }
 0x100   : > { %1640 = vmatpush.msrb.mxu0 %v3333_v56  ;;  %1660 = vmatpush.msrb.mxu1 %v3335_v61  ;;  %v2500_v55 = vpop.eup %2499 }
 0x101   : > { %v1174_v5 = vpop.f32.mrf.mxu3  ;;  %v1355_v62 = vadd.f32 %v2500_v55, %v2498_v52  ;;  %v1853_v52 = vld [vmem:[#allocation2 + $0x458] sm:$0xff]  ;;  %v1850_v55 = vld [vmem:[#allocation2 + $0x440] sm:$0xff] }
 0x102   : > { %1641 = vmatpush.msrb.mxu0 %v3340_v63  ;;  %1661 = vmatpush.msrb.mxu1 %v3342_v0  ;;  %v1216_v7 = vpop.f32.mrf.mxu1  ;;  %v1178_v15 = vadd.f32 %v1174_v5, %v3279_v51  ;;  %v3376_v51 = vld [vmem:[#allocation2 + $0x248] sm:$0xff]  ;;  %v3412_v5 = vld [vmem:[#allocation2 + $0x3f0] sm:$0xff] }
 0x104   : > { %1642 = vmatpush.msrb.mxu0 %v3347_v6  ;;  %1662 = vmatpush.msrb.mxu1 %v3349_v43  ;;  %v1220_v25 = vadd.f32 %v1216_v7, %v1178_v15  ;;  %v2502_v59 = vpop.eup %2501  ;;  %v3420_v7 = vld [vmem:[#allocation2 + $0x3e0] sm:$0xff]  ;;  %v3463_v15 = vld [vmem:[#allocation2 + $0x398] sm:$0xff] }
 0x106   : > { %1643 = vmatpush.msrb.mxu0 %v3353_v8  ;;  %1663 = vmatpush.msrb.mxu1 %v3355_v9 }
 0x108   : > { %1644 = vmatpush.msrb.mxu0 %v3359_v12  ;;  %1664 = vmatpush.msrb.mxu1 %v3361_v13 }
 0x109   : > { %v1258_v23 = vpop.f32.mrf.mxu3 }
 0x10a   : > { %1645 = vmatpush.msrb.mxu0 %v3366_v18  ;;  %1665 = vmatpush.msrb.mxu1 %v3368_v19  ;;  %v1262_v30 = vadd.f32 %v1258_v23, %v1220_v25  ;;  %v1300_v24 = vpop.f32.mrf.mxu1  ;;  %v3535_v23 = vld [vmem:[#allocation2 + $0x308] sm:$0xff]  ;;  %v3550_v25 = vld [vmem:[#allocation2 + $0x4e0] sm:$0xff] }
 0x10c   : > { %1646 = vmatpush.msrb.mxu0 %v3374_v16  ;;  %1666 = vmatpush.msrb.mxu1 %v3376_v51  ;;  %v1304_v38 = vadd.f32 %v1300_v24, %v1262_v30  ;;  %v3568_v30 = vld [vmem:[#allocation2 + $0x4c8] sm:$0xff]  ;;  %v3576_v24 = vld [vmem:[#allocation2 + $0x4b8] sm:$0xff] }
 0x10e   : > { %1647 = vmatpush.msrb.mxu0 %v3380_v28  ;;  %1667 = vmatpush.msrb.mxu1 %v3382_v29 }
 0x110   : > { %1648 = vmatpush.msrb.mxu0 %v3387_v32  ;;  %1668 = vmatpush.msrb.mxu1 %v3389_v34 }
 0x111   : > { %v1346_v39 = vpop.f32.mrf.mxu3 }
 0x112   : > { %v1350_v48 = vadd.f32 %v1346_v39, %v1304_v38  ;;  %1649 = vmatpush.msrb.mxu0 %v3394_v37  ;;  %1669 = vmatpush.msrb.mxu1 %v3396_v33  ;;  %v3606_v38 = vld [vmem:[#allocation2 + $0x470] sm:$0xff]  ;;  %v3608_v39 = vld [vmem:[#allocation2 + $0x478] sm:$0xff] }
 0x114   : > { %2503 = vtanh.f32 %v1350_v48  ;;  %1650 = vmatpush.msrb.mxu0 %v3400_v40  ;;  %1670 = vmatpush.msrb.mxu1 %v3402_v41  ;;  %v1852_v48 = vld [vmem:[#allocation2 + $0x450] sm:$0xff] }
 0x11a   : > { %v2504_v60 = vpop.eup %2503 }
 0x11b   : > { %v1356_v1 = vadd.f32 %v2504_v60, %v2502_v59  ;;  %v1851_v59 = vld [vmem:[#allocation2 + $0x448] sm:$0xff]  ;;  %v1848_v60 = vld [vmem:[#allocation2 + $0x430] sm:$0xff] }
 0x11d   : > { %v1359_v2 = vadd.f32 %v1356_v1, %v1355_v62  ;;  %v1849_v62 = vld [vmem:[#allocation2 + $0x438] sm:$0xff]  ;;  %v1846_v1 = vld [vmem:[#allocation2 + $0x420] sm:$0xff] }
 0x11f   : > { %v3408_v4 = vmul.f32 0.25, %v1359_v2  ;;  %v1847_v2 = vld [vmem:[#allocation2 + $0x428] sm:$0xff] }
 0x121   : > { %1456 = vmatmul.f32.vlgmr.msrb.gmra.mxu2 %v3408_v4  ;;  %1476 = vmatmul.f32.vlgmr.msrb.gmra.mxu3 %v3408_v4 }
 0x122   : > { %1531 = vmatmul.f32.vlgmr.msra.gmra.mxu0 %v3408_v4  ;;  %1551 = vmatmul.f32.vlgmr.msra.gmra.mxu1 %v3408_v4 }
 0x123   : > { %1680 = vmatpush.msrb.mxu2 %v3300_v44  ;;  %1700 = vmatpush.msrb.mxu3 %v3302_v45  ;;  %v3436_v44 = vld [vmem:[#allocation2 + $0x3c0] sm:$0xff]  ;;  %v3438_v45 = vld [vmem:[#allocation2 + $0x3c8] sm:$0xff] }
 0x124   : > { %1755 = vmatpush.msra.mxu0 %v3412_v5  ;;  %1775 = vmatpush.msra.mxu1 %v3414_v3 }
 0x125   : > { %1681 = vmatpush.msrb.mxu2 %v3306_v46  ;;  %1701 = vmatpush.msrb.mxu3 %v3308_v47  ;;  %v1558_v46 = vrot.slane %v3298_v42, 1  ;;  %v3447_v47 = vld [vmem:[#allocation2 + $0x3b0] sm:$0xff] }
 0x126   : > { %1756 = vmatpush.msra.mxu0 %v3420_v7  ;;  %1776 = vmatpush.msra.mxu1 %v3422_v10 }
 0x127   : > { %1682 = vmatpush.msrb.mxu2 %v3312_v49  ;;  %1702 = vmatpush.msrb.mxu3 %v3314_v50  ;;  %v3449_v49 = vld [vmem:[#allocation2 + $0x3b8] sm:$0xff]  ;;  %v3453_v50 = vld [vmem:[#allocation2 + $0x3a0] sm:$0xff] }
 0x128   : > { %1757 = vmatpush.msra.mxu0 %v3428_v11  ;;  %1777 = vmatpush.msra.mxu1 %v3430_v14 }
 0x129   : > { %1683 = vmatpush.msrb.mxu2 %v3318_v53  ;;  %1703 = vmatpush.msrb.mxu3 %v3320_v54  ;;  %v3455_v53 = vld [vmem:[#allocation2 + $0x3a8] sm:$0xff]  ;;  %v3461_v54 = vld [vmem:[#allocation2 + $0x390] sm:$0xff] }
 0x12a   : > { %1758 = vmatpush.msra.mxu0 %v3436_v44  ;;  %1778 = vmatpush.msra.mxu1 %v3438_v45 }
 0x12b   : > { %1576 = vmatmul.f32.vlgmr.msra.gmra.mxu2 %v1558_v46  ;;  %1596 = vmatmul.f32.vlgmr.msra.gmra.mxu3 %v1558_v46 }
 0x12c   : > { %1651 = vmatmul.f32.vlgmr.msrb.gmra.mxu0 %v1558_v46  ;;  %1671 = vmatmul.f32.vlgmr.msrb.gmra.mxu1 %v1558_v46  ;;  %v1981_v46 = vld [vmem:[#allocation5 + $0x60] sm:$0xff] }
 0x12d   : > { %1684 = vmatpush.msrb.mxu2 %v3326_v57  ;;  %1704 = vmatpush.msrb.mxu3 %v3328_v58  ;;  %v3469_v57 = vld [vmem:[#allocation2 + $0x380] sm:$0xff]  ;;  %v3471_v58 = vld [vmem:[#allocation2 + $0x388] sm:$0xff] }
 0x12e   : > { %1759 = vmatpush.msra.mxu0 %v3447_v47  ;;  %1779 = vmatpush.msra.mxu1 %v3449_v49 }
 0x12f   : > { %1685 = vmatpush.msrb.mxu2 %v3333_v56  ;;  %1705 = vmatpush.msrb.mxu3 %v3335_v61  ;;  %v3477_v56 = vld [vmem:[#allocation2 + $0x370] sm:$0xff]  ;;  %v3479_v61 = vld [vmem:[#allocation2 + $0x378] sm:$0xff] }
 0x130   : > { %1760 = vmatpush.msra.mxu0 %v3453_v50  ;;  %1780 = vmatpush.msra.mxu1 %v3455_v53 }
 0x131   : > { %1686 = vmatpush.msrb.mxu2 %v3340_v63  ;;  %1706 = vmatpush.msrb.mxu3 %v3342_v0  ;;  %v3485_v63 = vld [vmem:[#allocation2 + $0x360] sm:$0xff]  ;;  %v3487_v0 = vld [vmem:[#allocation2 + $0x368] sm:$0xff] }
 0x132   : > { %1761 = vmatpush.msra.mxu0 %v3461_v54  ;;  %1781 = vmatpush.msra.mxu1 %v3463_v15 }
 0x133   : > { %1687 = vmatpush.msrb.mxu2 %v3347_v6  ;;  %1707 = vmatpush.msrb.mxu3 %v3349_v43  ;;  %v3493_v6 = vld [vmem:[#allocation2 + $0x350] sm:$0xff]  ;;  %v3495_v43 = vld [vmem:[#allocation2 + $0x358] sm:$0xff] }
 0x134   : > { %1762 = vmatpush.msra.mxu0 %v3469_v57  ;;  %1782 = vmatpush.msra.mxu1 %v3471_v58 }
 0x135   : > { %1688 = vmatpush.msrb.mxu2 %v3353_v8  ;;  %1708 = vmatpush.msrb.mxu3 %v3355_v9  ;;  %v3501_v8 = vld [vmem:[#allocation2 + $0x340] sm:$0xff]  ;;  %v3503_v9 = vld [vmem:[#allocation2 + $0x348] sm:$0xff] }
 0x136   : > { %1763 = vmatpush.msra.mxu0 %v3477_v56  ;;  %1783 = vmatpush.msra.mxu1 %v3479_v61 }
 0x137   : > { %1689 = vmatpush.msrb.mxu2 %v3359_v12  ;;  %1709 = vmatpush.msrb.mxu3 %v3361_v13  ;;  %v3509_v12 = vld [vmem:[#allocation2 + $0x330] sm:$0xff]  ;;  %v3511_v13 = vld [vmem:[#allocation2 + $0x338] sm:$0xff] }
 0x138   : > { %1764 = vmatpush.msra.mxu0 %v3485_v63  ;;  %1784 = vmatpush.msra.mxu1 %v3487_v0 }
 0x139   : > { %1690 = vmatpush.msrb.mxu2 %v3366_v18  ;;  %1710 = vmatpush.msrb.mxu3 %v3368_v19  ;;  %v3519_v18 = vld [vmem:[#allocation2 + $0x328] sm:$0xff]  ;;  %v3525_v19 = vld [vmem:[#allocation2 + $0x310] sm:$0xff] }
 0x13a   : > { %1765 = vmatpush.msra.mxu0 %v3493_v6  ;;  %1785 = vmatpush.msra.mxu1 %v3495_v43 }
 0x13b   : > { %1691 = vmatpush.msrb.mxu2 %v3374_v16  ;;  %1711 = vmatpush.msrb.mxu3 %v3376_v51  ;;  %v1678_v16 = vrot.slane %v3408_v4, 1  ;;  %v3544_v51 = vld [vmem:[#allocation2 + $0x4f0] sm:$0xff] }
 0x13c   : > { %1766 = vmatpush.msra.mxu0 %v3501_v8  ;;  %1786 = vmatpush.msra.mxu1 %v3503_v9 }
 0x13d   : > { %1692 = vmatpush.msrb.mxu2 %v3380_v28  ;;  %1712 = vmatpush.msrb.mxu3 %v3382_v29  ;;  %v3560_v28 = vld [vmem:[#allocation2 + $0x4d8] sm:$0xff]  ;;  %v3566_v29 = vld [vmem:[#allocation2 + $0x4c0] sm:$0xff] }
 0x13e   : > { %1767 = vmatpush.msra.mxu0 %v3509_v12  ;;  %1787 = vmatpush.msra.mxu1 %v3511_v13 }
 0x13f   : > { %1693 = vmatpush.msrb.mxu2 %v3387_v32  ;;  %1713 = vmatpush.msrb.mxu3 %v3389_v34  ;;  %v3582_v32 = vld [vmem:[#allocation2 + $0x4a0] sm:$0xff]  ;;  %v3584_v34 = vld [vmem:[#allocation2 + $0x4a8] sm:$0xff] }
 0x140   : > { %1768 = vmatpush.msra.mxu0 %v3517_v17  ;;  %1788 = vmatpush.msra.mxu1 %v3519_v18 }
 0x141   : > { %1694 = vmatpush.msrb.mxu2 %v3394_v37  ;;  %1714 = vmatpush.msrb.mxu3 %v3396_v33  ;;  %v3598_v37 = vld [vmem:[#allocation2 + $0x480] sm:$0xff]  ;;  %v3600_v33 = vld [vmem:[#allocation2 + $0x488] sm:$0xff] }
 0x142   : > { %1769 = vmatpush.msra.mxu0 %v3525_v19  ;;  %1789 = vmatpush.msra.mxu1 %v3527_v20 }
 0x143   : > { %1695 = vmatpush.msrb.mxu2 %v3400_v40  ;;  %1715 = vmatpush.msrb.mxu3 %v3402_v41  ;;  %v3614_v40 = vld [vmem:[#allocation2 + $0x460] sm:$0xff]  ;;  %v3616_v41 = vld [vmem:[#allocation2 + $0x468] sm:$0xff] }
 0x144   : > { %1770 = vmatpush.msra.mxu0 %v3533_v22  ;;  %1790 = vmatpush.msra.mxu1 %v3535_v23 }
 0x145   : > { %1696 = vmatmul.f32.vlgmr.msrb.gmra.mxu2 %v1678_v16  ;;  %1716 = vmatmul.f32.vlgmr.msrb.gmra.mxu3 %v1678_v16 }
 0x146   : > { %1771 = vmatmul.f32.vlgmr.msra.gmra.mxu0 %v1678_v16  ;;  %1791 = vmatmul.f32.vlgmr.msra.gmra.mxu1 %v1678_v16  ;;  %v1973_v16 = vld [vmem:[#allocation5 + $0x20] sm:$0xff] }
 0x147   : > { %1799 = vmatpush.msra.mxu2 %v3412_v5  ;;  %1819 = vmatpush.msra.mxu3 %v3414_v3  ;;  %v1844_v5 = vld [vmem:[#allocation2 + $0x410] sm:$0xff]  ;;  %v1845_v3 = vld [vmem:[#allocation2 + $0x418] sm:$0xff] }
 0x148   : > { %1874 = vmatpush.msrb.mxu0 %v3544_v51  ;;  %1894 = vmatpush.msrb.mxu1 %v3546_v21 }
 0x149   : > { %1800 = vmatpush.msra.mxu2 %v3420_v7  ;;  %1820 = vmatpush.msra.mxu3 %v3422_v10  ;;  %v1842_v7 = vld [vmem:[#allocation2 + $0x400] sm:$0xff]  ;;  %v1843_v10 = vld [vmem:[#allocation2 + $0x408] sm:$0xff] }
 0x14a   : > { %1875 = vmatpush.msrb.mxu0 %v3550_v25  ;;  %1895 = vmatpush.msrb.mxu1 %v3552_v26 }
 0x14b   : > { %1801 = vmatpush.msra.mxu2 %v3428_v11  ;;  %1821 = vmatpush.msra.mxu3 %v3430_v14  ;;  %v1797_v11 = vrot.slane %v3298_v42, 2  ;;  %v1916_v42 = vrot.slane %v3408_v4, 2  ;;  %v1984_v14 = vld [vmem:[#allocation5 + $0x78] sm:$0xff]  ;;  %v2021_v4 = vld [vmem:[#allocation5 + $0xf0] sm:$0xff] }
 0x14c   : > { %1876 = vmatpush.msrb.mxu0 %v3558_v27  ;;  %1896 = vmatpush.msrb.mxu1 %v3560_v28 }
 0x14d   : > { %1802 = vmatpush.msra.mxu2 %v3436_v44  ;;  %1822 = vmatpush.msra.mxu3 %v3438_v45  ;;  %v1983_v44 = vld [vmem:[#allocation5 + $0x70] sm:$0xff]  ;;  %v1982_v45 = vld [vmem:[#allocation5 + $0x68] sm:$0xff] }
 0x14e   : > { %1877 = vmatpush.msrb.mxu0 %v3566_v29  ;;  %1897 = vmatpush.msrb.mxu1 %v3568_v30 }
 0x14f   : > { %1803 = vmatpush.msra.mxu2 %v3447_v47  ;;  %1823 = vmatpush.msra.mxu3 %v3449_v49  ;;  %v1980_v47 = vld [vmem:[#allocation5 + $0x58] sm:$0xff]  ;;  %v1979_v49 = vld [vmem:[#allocation5 + $0x50] sm:$0xff] }
 0x150   : > { %1878 = vmatpush.msrb.mxu0 %v3574_v31  ;;  %1898 = vmatpush.msrb.mxu1 %v3576_v24 }
 0x151   : > { %1804 = vmatpush.msra.mxu2 %v3453_v50  ;;  %1824 = vmatpush.msra.mxu3 %v3455_v53  ;;  %v1978_v50 = vld [vmem:[#allocation5 + $0x48] sm:$0xff]  ;;  %v2022_v53 = vld [vmem:[#allocation5 + $0xf8] sm:$0xff] }
 0x152   : > { %1879 = vmatpush.msrb.mxu0 %v3582_v32  ;;  %1899 = vmatpush.msrb.mxu1 %v3584_v34 }
 0x153   : > { %1805 = vmatpush.msra.mxu2 %v3461_v54  ;;  %1825 = vmatpush.msra.mxu3 %v3463_v15  ;;  %v2063_v54 = vld [vmem:[#allocation5 + $0x178] sm:$0xff] }
 0x154   : > { %1880 = vmatpush.msrb.mxu0 %v3590_v35  ;;  %1900 = vmatpush.msrb.mxu1 %v3592_v36  ;;  %v2103_v15 = vld [vmem:[#allocation5 + $0x1f8] sm:$0xff] }
 0x155   : > { %1806 = vmatpush.msra.mxu2 %v3469_v57  ;;  %1826 = vmatpush.msra.mxu3 %v3471_v58  ;;  %v2062_v57 = vld [vmem:[#allocation5 + $0x170] sm:$0xff]  ;;  %v1977_v58 = vld [vmem:[#allocation5 + $0x40] sm:$0xff] }
 0x156   : > { %1881 = vmatpush.msrb.mxu0 %v3598_v37  ;;  %1901 = vmatpush.msrb.mxu1 %v3600_v33 }
 0x157   : > { %1807 = vmatpush.msra.mxu2 %v3477_v56  ;;  %1827 = vmatpush.msra.mxu3 %v3479_v61  ;;  %v2102_v56 = vld [vmem:[#allocation5 + $0x1f0] sm:$0xff]  ;;  %v2020_v61 = vld [vmem:[#allocation5 + $0xe8] sm:$0xff] }
 0x158   : > { %1882 = vmatpush.msrb.mxu0 %v3606_v38  ;;  %1902 = vmatpush.msrb.mxu1 %v3608_v39 }
 0x159   : > { %1808 = vmatpush.msra.mxu2 %v3485_v63  ;;  %1828 = vmatpush.msra.mxu3 %v3487_v0  ;;  %v2061_v63 = vld [vmem:[#allocation5 + $0x168] sm:$0xff] }
 0x15a   : > { %1883 = vmatpush.msrb.mxu0 %v3614_v40  ;;  %1903 = vmatpush.msrb.mxu1 %v3616_v41  ;;  %v2101_v0 = vld [vmem:[#allocation5 + $0x1e8] sm:$0xff] }
 0x15b   : > { %1809 = vmatpush.msra.mxu2 %v3493_v6  ;;  %1829 = vmatpush.msra.mxu3 %v3495_v43  ;;  %v1976_v6 = vld [vmem:[#allocation5 + $0x38] sm:$0xff]  ;;  %v2019_v43 = vld [vmem:[#allocation5 + $0xe0] sm:$0xff] }
 0x15c   : > { %1884 = vmatpush.msrb.mxu0 %v1852_v48  ;;  %1904 = vmatpush.msrb.mxu1 %v1853_v52 }
 0x15d   : > { %1810 = vmatpush.msra.mxu2 %v3501_v8  ;;  %1830 = vmatpush.msra.mxu3 %v3503_v9  ;;  %v2060_v8 = vld [vmem:[#allocation5 + $0x160] sm:$0xff] }
 0x15e   : > { %1885 = vmatpush.msrb.mxu0 %v1850_v55  ;;  %1905 = vmatpush.msrb.mxu1 %v1851_v59  ;;  %v2100_v9 = vld [vmem:[#allocation5 + $0x1e0] sm:$0xff] }
 0x15f   : > { %1811 = vmatpush.msra.mxu2 %v3509_v12  ;;  %1831 = vmatpush.msra.mxu3 %v3511_v13  ;;  %v1975_v12 = vld [vmem:[#allocation5 + $0x30] sm:$0xff]  ;;  %v2018_v13 = vld [vmem:[#allocation5 + $0xd8] sm:$0xff] }
 0x160   : > { %1886 = vmatpush.msrb.mxu0 %v1848_v60  ;;  %1906 = vmatpush.msrb.mxu1 %v1849_v62 }
 0x161   : > { %1812 = vmatpush.msra.mxu2 %v3517_v17  ;;  %1832 = vmatpush.msra.mxu3 %v3519_v18  ;;  %v2059_v17 = vld [vmem:[#allocation5 + $0x158] sm:$0xff] }
 0x162   : > { %1887 = vmatpush.msrb.mxu0 %v1846_v1  ;;  %1907 = vmatpush.msrb.mxu1 %v1847_v2  ;;  %v2099_v18 = vld [vmem:[#allocation5 + $0x1d8] sm:$0xff] }
 0x163   : > { %1813 = vmatpush.msra.mxu2 %v3525_v19  ;;  %1833 = vmatpush.msra.mxu3 %v3527_v20  ;;  %v1974_v19 = vld [vmem:[#allocation5 + $0x28] sm:$0xff]  ;;  %v2017_v20 = vld [vmem:[#allocation5 + $0xd0] sm:$0xff] }
 0x164   : > { %1888 = vmatpush.msrb.mxu0 %v1844_v5  ;;  %1908 = vmatpush.msrb.mxu1 %v1845_v3 }
 0x165   : > { %1814 = vmatpush.msra.mxu2 %v3533_v22  ;;  %1834 = vmatpush.msra.mxu3 %v3535_v23  ;;  %v2058_v22 = vld [vmem:[#allocation5 + $0x150] sm:$0xff] }
 0x166   : > { %1889 = vmatpush.msrb.mxu0 %v1842_v7  ;;  %1909 = vmatpush.msrb.mxu1 %v1843_v10  ;;  %v2098_v23 = vld [vmem:[#allocation5 + $0x1d0] sm:$0xff] }
 0x167   : > { %1815 = vmatmul.f32.vlgmr.msra.gmra.mxu2 %v1797_v11  ;;  %1835 = vmatmul.f32.vlgmr.msra.gmra.mxu3 %v1797_v11 }
 0x168   : > { %1890 = vmatmul.f32.vlgmr.msrb.gmra.mxu0 %v1797_v11  ;;  %1910 = vmatmul.f32.vlgmr.msrb.gmra.mxu1 %v1797_v11 }
 0x169   : > { %1918 = vmatpush.msrb.mxu2 %v3544_v51  ;;  %1938 = vmatpush.msrb.mxu3 %v3546_v21  ;;  %v2016_v51 = vld [vmem:[#allocation5 + $0xc8] sm:$0xff] }
 0x16a   : > { %1985 = vmatpush.msra.mxu0 %v1984_v14  ;;  %2026 = vmatpush.msra.mxu1 %v2022_v53  ;;  %v2057_v21 = vld [vmem:[#allocation5 + $0x148] sm:$0xff]  ;;  %v2136_v14 = vld [vmem:[#allocation5 + $0x240] sm:$0xff]  ;;  %v2010_v53 = vld [vmem:[#allocation5 + $0x98] sm:$0xff] }
 0x16b   : > { %1919 = vmatpush.msrb.mxu2 %v3550_v25  ;;  %1939 = vmatpush.msrb.mxu3 %v3552_v26  ;;  %v2097_v25 = vld [vmem:[#allocation5 + $0x1c8] sm:$0xff]  ;;  %v1972_v26 = vld [vmem:[#allocation5 + $0x18] sm:$0xff] }
 0x16c   : > { %1986 = vmatpush.msra.mxu0 %v1983_v44  ;;  %2027 = vmatpush.msra.mxu1 %v2021_v4  ;;  %v2011_v44 = vld [vmem:[#allocation5 + $0xa0] sm:$0xff]  ;;  %v2134_v4 = vld [vmem:[#allocation5 + $0x230] sm:$0xff] }
 0x16d   : > { %1920 = vmatpush.msrb.mxu2 %v3558_v27  ;;  %1940 = vmatpush.msrb.mxu3 %v3560_v28  ;;  %v1971_v27 = vld [vmem:[#allocation5 + $0x10] sm:$0xff]  ;;  %v1970_v28 = vld [vmem:[#allocation5 + $0x8] sm:$0xff] }
 0x16e   : > { %1987 = vmatpush.msra.mxu0 %v1982_v45  ;;  %2028 = vmatpush.msra.mxu1 %v2020_v61  ;;  %v2052_v45 = vld [vmem:[#allocation5 + $0x120] sm:$0xff] }
 0x16f   : > { %1921 = vmatpush.msrb.mxu2 %v3566_v29  ;;  %1941 = vmatpush.msrb.mxu3 %v3568_v30  ;;  %v1969_v29 = vld [vmem:[#allocation5] sm:$0xff]  ;;  %v2143_v30 = vld [vmem:[#allocation5 + $0x278] sm:$0xff] }
 0x170   : > { %1988 = vmatpush.msra.mxu0 %v1981_v46  ;;  %2029 = vmatpush.msra.mxu1 %v2019_v43  ;;  %v2092_v46 = vld [vmem:[#allocation5 + $0x1a0] sm:$0xff]  ;;  %v2089_v43 = vld [vmem:[#allocation5 + $0x188] sm:$0xff] }
 0x171   : > { %1922 = vmatpush.msrb.mxu2 %v3574_v31  ;;  %1942 = vmatpush.msrb.mxu3 %v3576_v24  ;;  %v2142_v24 = vld [vmem:[#allocation5 + $0x270] sm:$0xff]  ;;  %v419_v61 = vld [vmem:[%s3826_s4] sm:$0x3] }
 0x172   : > { %1989 = vmatpush.msra.mxu0 %v1980_v47  ;;  %2030 = vmatpush.msra.mxu1 %v2018_v13  ;;  %v3658_v31 = vpop.f32.mrf.mxu0  ;;  %v1434_v13 = vperm.slane %v419_v61, 0 }
 0x173   : > { %1923 = vmatpush.msrb.mxu2 %v3582_v32  ;;  %1943 = vmatpush.msrb.mxu3 %v3584_v34  ;;  %v3660_v32 = vpop.f32.mrf.mxu1  ;;  %v2141_v34 = vld [vmem:[#allocation5 + $0x268] sm:$0xff] }
 0x174   : > { %1990 = vmatpush.msra.mxu0 %v1979_v49  ;;  %2031 = vmatpush.msra.mxu1 %v2017_v20  ;;  %v2135_v49 = vld [vmem:[#allocation5 + $0x238] sm:$0xff]  ;;  %v1435_v20 = vperm.slane %v419_v61, 1  ;;  %v2176_v61 = vld [vmem:[%s3829_s7 + $0x40] sm:$0xff] }
 0x175   : > { %1924 = vmatpush.msrb.mxu2 %v3590_v35  ;;  %1944 = vmatpush.msrb.mxu3 %v3592_v36  ;;  %v2140_v35 = vld [vmem:[#allocation5 + $0x260] sm:$0xff] }
 0x176   : > { %1991 = vmatpush.msra.mxu0 %v1978_v50  ;;  %2032 = vmatpush.msra.mxu1 %v2016_v51  ;;  %v2130_v51 = vld [vmem:[#allocation5 + $0x210] sm:$0xff] }
 0x177   : > { %1925 = vmatpush.msrb.mxu2 %v3598_v37  ;;  %1945 = vmatpush.msrb.mxu3 %v3600_v33 }
 0x178   : > { %1992 = vmatpush.msra.mxu0 %v1977_v58  ;;  %v2050_v58 = vld [vmem:[#allocation5 + $0x110] sm:$0xff] }
 0x179   : > { %1926 = vmatpush.msrb.mxu2 %v3606_v38  ;;  %1946 = vmatpush.msrb.mxu3 %v3608_v39  ;;  %v2015_v39 = vld [vmem:[#allocation5 + $0xc0] sm:$0xff] }
 0x17a   : > { %1993 = vmatpush.msra.mxu0 %v1976_v6  ;;  %2033 = vmatpush.msra.mxu1 %v2015_v39  ;;  %v2049_v6 = vld [vmem:[#allocation5 + $0x108] sm:$0xff] }
 0x17b   : > { %1927 = vmatpush.msrb.mxu2 %v3614_v40  ;;  %1947 = vmatpush.msrb.mxu3 %v3616_v41  ;;  %v2056_v40 = vld [vmem:[#allocation5 + $0x140] sm:$0xff] }
 0x17c   : > { %1994 = vmatpush.msra.mxu0 %v1975_v12  ;;  %v2096_v41 = vld [vmem:[#allocation5 + $0x1c0] sm:$0xff] }
 0x17d   : > { %1928 = vmatpush.msrb.mxu2 %v1852_v48  ;;  %1948 = vmatpush.msrb.mxu3 %v1853_v52  ;;  %v2139_v48 = vld [vmem:[#allocation5 + $0x258] sm:$0xff]  ;;  %v2132_v12 = vld [vmem:[#allocation5 + $0x220] sm:$0xff] }
 0x17e   : > { %1995 = vmatpush.msra.mxu0 %v1974_v19  ;;  %v2014_v52 = vld [vmem:[#allocation5 + $0xb8] sm:$0xff]  ;;  %v2088_v19 = vld [vmem:[#allocation5 + $0x180] sm:$0xff] }
 0x17f   : > { %1929 = vmatpush.msrb.mxu2 %v1850_v55  ;;  %1949 = vmatpush.msrb.mxu3 %v1851_v59  ;;  %v2055_v55 = vld [vmem:[#allocation5 + $0x138] sm:$0xff] }
 0x180   : > { %1996 = vmatpush.msra.mxu0 %v1973_v16  ;;  %v2095_v59 = vld [vmem:[#allocation5 + $0x1b8] sm:$0xff]  ;;  %2034 = vmatpush.msra.mxu1 %v2014_v52 }
 0x181   : > { %1930 = vmatpush.msrb.mxu2 %v1848_v60  ;;  %1950 = vmatpush.msrb.mxu3 %v1849_v62  ;;  %v2138_v60 = vld [vmem:[#allocation5 + $0x250] sm:$0xff] }
 0x182   : > { %1997 = vmatpush.msra.mxu0 %v1972_v26  ;;  %v2013_v62 = vld [vmem:[#allocation5 + $0xb0] sm:$0xff]  ;;  %v1439_v26 = vadd.f32 %v1435_v20, %v3660_v32 }
 0x183   : > { %1931 = vmatpush.msrb.mxu2 %v1846_v1  ;;  %1951 = vmatpush.msrb.mxu3 %v1847_v2  ;;  %v2054_v1 = vld [vmem:[#allocation5 + $0x130] sm:$0xff] }
 0x184   : > { %1998 = vmatpush.msra.mxu0 %v1971_v27  ;;  %v2094_v2 = vld [vmem:[#allocation5 + $0x1b0] sm:$0xff]  ;;  %2035 = vmatpush.msra.mxu1 %v2013_v62  ;;  %v2128_v27 = vld [vmem:[#allocation5 + $0x200] sm:$0xff] }
 0x185   : > { %1932 = vmatpush.msrb.mxu2 %v1844_v5  ;;  %1952 = vmatpush.msrb.mxu3 %v1845_v3  ;;  %v2137_v5 = vld [vmem:[#allocation5 + $0x248] sm:$0xff]  ;;  %v2182_v32 = vld [vmem:[%s3829_s7 + $0x70] sm:$0xff]  ;;  %v2180_v62 = vld [vmem:[%s3829_s7 + $0x60] sm:$0xff] }
 0x186   : > { %1999 = vmatpush.msra.mxu0 %v1970_v28  ;;  %v2012_v3 = vld [vmem:[#allocation5 + $0xa8] sm:$0xff] }
 0x187   : > { %1933 = vmatpush.msrb.mxu2 %v1842_v7  ;;  %1953 = vmatpush.msrb.mxu3 %v1843_v10  ;;  %v2053_v7 = vld [vmem:[#allocation5 + $0x128] sm:$0xff] }
 0x188   : > { %1934 = vmatmul.f32.vlgmr.msrb.gmra.mxu2 %v1916_v42  ;;  %1954 = vmatmul.f32.vlgmr.msrb.gmra.mxu3 %v1916_v42  ;;  %v2093_v10 = vld [vmem:[#allocation5 + $0x1a8] sm:$0xff] }
 0x189   : > { %2066 = vmatpush.msra.mxu2 %v2063_v54  ;;  %2106 = vmatpush.msra.mxu3 %v2103_v15  ;;  %v2051_v54 = vld [vmem:[#allocation5 + $0x118] sm:$0xff] }
 0x18a   : > { %2000 = vmatpush.msra.mxu0 %v1969_v29  ;;  %2036 = vmatpush.msra.mxu1 %v2012_v3  ;;  %v2091_v15 = vld [vmem:[#allocation5 + $0x198] sm:$0xff] }
 0x18b   : > { %2067 = vmatpush.msra.mxu2 %v2062_v57  ;;  %2107 = vmatpush.msra.mxu3 %v2102_v56  ;;  %v2009_v57 = vld [vmem:[#allocation5 + $0x90] sm:$0xff]  ;;  %v2179_v3 = vld [vmem:[%s3829_s7 + $0x58] sm:$0xff] }
 0x18c   : > { %2146 = vmatpush.msrb.mxu0 %v2143_v30  ;;  %2037 = vmatpush.msra.mxu1 %v2011_v44  ;;  %v2090_v56 = vld [vmem:[#allocation5 + $0x190] sm:$0xff] }
 0x18d   : > { %2068 = vmatpush.msra.mxu2 %v2061_v63  ;;  %2108 = vmatpush.msra.mxu3 %v2101_v0  ;;  %v2133_v63 = vld [vmem:[#allocation5 + $0x228] sm:$0xff] }
 0x18e   : > { %2147 = vmatpush.msrb.mxu0 %v2142_v24  ;;  %2038 = vmatpush.msra.mxu1 %v2010_v53  ;;  %v2008_v0 = vld [vmem:[#allocation5 + $0x88] sm:$0xff] }
 0x18f   : > { %2069 = vmatpush.msra.mxu2 %v2060_v8  ;;  %2109 = vmatpush.msra.mxu3 %v2100_v9 }
 0x190   : > { %2148 = vmatpush.msrb.mxu0 %v2141_v34  ;;  %2039 = vmatpush.msra.mxu1 %v2009_v57 }
 0x191   : > { %2070 = vmatpush.msra.mxu2 %v2059_v17  ;;  %2110 = vmatpush.msra.mxu3 %v2099_v18  ;;  %v2007_v17 = vld [vmem:[#allocation5 + $0x80] sm:$0xff] }
 0x192   : > { %2149 = vmatpush.msrb.mxu0 %v2140_v35  ;;  %2040 = vmatpush.msra.mxu1 %v2008_v0  ;;  %v2048_v18 = vld [vmem:[#allocation5 + $0x100] sm:$0xff]  ;;  %v2174_v0 = vld [vmem:[%s3829_s7 + $0x30] sm:$0xff] }
 0x193   : > { %2071 = vmatpush.msra.mxu2 %v2058_v22  ;;  %2111 = vmatpush.msra.mxu3 %v2098_v23  ;;  %v2131_v23 = vld [vmem:[#allocation5 + $0x218] sm:$0xff] }
 0x194   : > { %2150 = vmatpush.msrb.mxu0 %v2139_v48  ;;  %2041 = vmatpush.msra.mxu1 %v2007_v17  ;;  %v2221_v17 = vld [vmem:[%s3831_s9 + $0x78] sm:$0xff] }
 0x195   : > { %2072 = vmatpush.msra.mxu2 %v2057_v21  ;;  %2112 = vmatpush.msra.mxu3 %v2097_v25  ;;  %v2129_v21 = vld [vmem:[#allocation5 + $0x208] sm:$0xff]  ;;  %v1438_v25 = vadd.f32 %v1434_v13, %v3658_v31  ;;  %v2183_v31 = vld [vmem:[%s3829_s7 + $0x78] sm:$0xff] }
 0x196   : > { %2151 = vmatpush.msrb.mxu0 %v2138_v60  ;;  %2185 = vmatpush.msrb.mxu1 %v2183_v31 }
 0x197   : > { %2073 = vmatpush.msra.mxu2 %v2056_v40  ;;  %2113 = vmatpush.msra.mxu3 %v2096_v41 }
 0x198   : > { %2152 = vmatpush.msrb.mxu0 %v2137_v5  ;;  %2186 = vmatpush.msrb.mxu1 %v2182_v32 }
 0x199   : > { %2074 = vmatpush.msra.mxu2 %v2055_v55  ;;  %2114 = vmatpush.msra.mxu3 %v2095_v59 }
 0x19a   : > { %2153 = vmatpush.msrb.mxu0 %v2136_v14 }
 0x19b   : > { %2075 = vmatpush.msra.mxu2 %v2054_v1  ;;  %2115 = vmatpush.msra.mxu3 %v2094_v2 }
 0x19c   : > { %2154 = vmatpush.msrb.mxu0 %v2135_v49 }
 0x19d   : > { %2076 = vmatpush.msra.mxu2 %v2053_v7  ;;  %2116 = vmatpush.msra.mxu3 %v2093_v10 }
 0x19e   : > { %2155 = vmatpush.msrb.mxu0 %v2134_v4 }
 0x19f   : > { %v3666_v33 = vpop.f32.mrf.mxu0  ;;  %v3668_v38 = vpop.f32.mrf.mxu1  ;;  %2077 = vmatpush.msra.mxu2 %v2052_v45  ;;  %2117 = vmatpush.msra.mxu3 %v2092_v46 }
 0x1a0   : > { %2156 = vmatpush.msrb.mxu0 %v2133_v63  ;;  %v1555_v28 = vadd.f32 %v3666_v33, %v1438_v25  ;;  %v1556_v29 = vadd.f32 %v3668_v38, %v1439_v26  ;;  %v2175_v63 = vld [vmem:[%s3829_s7 + $0x38] sm:$0xff]  ;;  %v2214_v25 = vld [vmem:[%s3831_s9 + $0x40] sm:$0xff] }
 0x1a1   : > { %2078 = vmatpush.msra.mxu2 %v2051_v54  ;;  %2118 = vmatpush.msra.mxu3 %v2091_v15 }
 0x1a2   : > { %2157 = vmatpush.msrb.mxu0 %v2132_v12  ;;  %v2169_v12 = vld [vmem:[%s3829_s7 + $0x8] sm:$0xff] }
 0x1a3   : > { %2079 = vmatpush.msra.mxu2 %v2050_v58  ;;  %2119 = vmatpush.msra.mxu3 %v2090_v56  ;;  %v2178_v58 = vld [vmem:[%s3829_s7 + $0x50] sm:$0xff]  ;;  %v2177_v56 = vld [vmem:[%s3829_s7 + $0x48] sm:$0xff] }
 0x1a4   : > { %v3662_v36 = vpop.f32.mrf.mxu2  ;;  %v3664_v37 = vpop.f32.mrf.mxu3  ;;  %2158 = vmatpush.msrb.mxu0 %v2131_v23  ;;  %v2216_v23 = vld [vmem:[%s3831_s9 + $0x50] sm:$0xff] }
 0x1a5   : > { %2080 = vmatpush.msra.mxu2 %v2049_v6  ;;  %2120 = vmatpush.msra.mxu3 %v2089_v43  ;;  %v1480_v34 = vadd.f32 %v3662_v36, %v1434_v13  ;;  %v1481_v35 = vadd.f32 %v3664_v37, %v1435_v20  ;;  %v2181_v37 = vld [vmem:[%s3829_s7 + $0x68] sm:$0xff]  ;;  %v2172_v43 = vld [vmem:[%s3829_s7 + $0x20] sm:$0xff] }
 0x1a6   : > { %2159 = vmatpush.msrb.mxu0 %v2130_v51  ;;  %2187 = vmatpush.msrb.mxu1 %v2181_v37  ;;  %v2173_v6 = vld [vmem:[%s3829_s7 + $0x28] sm:$0xff]  ;;  %v2168_v13 = vld [vmem:[%s3829_s7] sm:$0xff] }
 0x1a7   : > { %2081 = vmatpush.msra.mxu2 %v2048_v18  ;;  %2121 = vmatpush.msra.mxu3 %v2088_v19  ;;  %v2220_v18 = vld [vmem:[%s3831_s9 + $0x70] sm:$0xff]  ;;  %v2219_v19 = vld [vmem:[%s3831_s9 + $0x68] sm:$0xff]  ;;  %v2218_v20 = vld [vmem:[%s3831_s9 + $0x60] sm:$0xff] }
 0x1a8   : > { %2160 = vmatpush.msrb.mxu0 %v2129_v21  ;;  %2188 = vmatpush.msrb.mxu1 %v2180_v62  ;;  %v2215_v21 = vld [vmem:[%s3831_s9 + $0x48] sm:$0xff]  ;;  %v2206_v37 = vld [vmem:[%s3831_s9] sm:$0xff] }
 0x1a9   : > { %v1652_v47 = vpop.f32.mrf.mxu0  ;;  %v1672_v50 = vpop.f32.mrf.mxu1  ;;  %2223 = vmatpush.msrb.mxu2 %v2221_v17  ;;  %v2222_v62 = vld [vmem:[%s3832_s10] sm:$0x1] }
 0x1aa   : > { %v1675_v39 = vadd.f32 %v1652_v47, %v1555_v28  ;;  %2161 = vmatpush.msrb.mxu0 %v2128_v27  ;;  %v1676_v33 = vadd.f32 %v1672_v50, %v1556_v29  ;;  %2189 = vmatpush.msrb.mxu1 %v2179_v3  ;;  %v2213_v28 = vld [vmem:[%s3831_s9 + $0x38] sm:$0xff]  ;;  %v2212_v29 = vld [vmem:[%s3831_s9 + $0x30] sm:$0xff] }
 0x1ab   : > { %2224 = vmatpush.msrb.mxu2 %v2220_v18 }
 0x1ac   : > { %2190 = vmatpush.msrb.mxu1 %v2178_v58 }
 0x1ad   : > { %2225 = vmatpush.msrb.mxu2 %v2219_v19 }
 0x1ae   : > { %v3670_v11 = vpop.f32.mrf.mxu2  ;;  %v3672_v42 = vpop.f32.mrf.mxu3  ;;  %2191 = vmatpush.msrb.mxu1 %v2177_v56 }
 0x1af   : > { %v1600_v38 = vadd.f32 %v3670_v11, %v1480_v34  ;;  %v1601_v41 = vadd.f32 %v3672_v42, %v1481_v35  ;;  %2226 = vmatpush.msrb.mxu2 %v2218_v20  ;;  %v2211_v34 = vld [vmem:[%s3831_s9 + $0x28] sm:$0xff] }
 0x1b0   : > { %2192 = vmatpush.msrb.mxu1 %v2176_v61 }
 0x1b2   : > { %2193 = vmatpush.msrb.mxu1 %v2175_v63 }
 0x1b4   : > { %2194 = vmatpush.msrb.mxu1 %v2174_v0 }
 0x1b6   : > { %2195 = vmatpush.msrb.mxu1 %v2173_v6 }
 0x1b8   : > { %2196 = vmatpush.msrb.mxu1 %v2172_v43 }
 0x1c3   : > { %v1772_v22 = vpop.f32.mrf.mxu0  ;;  %v1792_v16 = vpop.f32.mrf.mxu1 }
 0x1c4   : > { %v1795_v36 = vadd.f32 %v1772_v22, %v1675_v39  ;;  %v1796_v52 = vadd.f32 %v1792_v16, %v1676_v33  ;;  %v2217_v22 = vld [vmem:[%s3831_s9 + $0x58] sm:$0xff]  ;;  %v1968_v16 = vld [vmem:[%s3828_s6] sm:$0x1] }
 0x1c5   : > { %2227 = vmatpush.msrb.mxu2 %v2217_v22 }
 0x1c7   : > { %2228 = vmatpush.msrb.mxu2 %v2216_v23 }
 0x1c8   : > { %v1697_v8 = vpop.f32.mrf.mxu2  ;;  %v1717_v9 = vpop.f32.mrf.mxu3 }
 0x1c9   : > { %v1720_v55 = vadd.f32 %v1697_v8, %v1600_v38  ;;  %v1721_v59 = vadd.f32 %v1717_v9, %v1601_v41  ;;  %v2171_v8 = vld [vmem:[%s3829_s7 + $0x18] sm:$0xff]  ;;  %v2170_v9 = vld [vmem:[%s3829_s7 + $0x10] sm:$0xff]  ;;  %2229 = vmatpush.msrb.mxu2 %v2215_v21  ;;  %v2210_v38 = vld [vmem:[%s3831_s9 + $0x20] sm:$0xff] }
 0x1ca   : > { %2197 = vmatpush.msrb.mxu1 %v2171_v8  ;;  %v2209_v41 = vld [vmem:[%s3831_s9 + $0x18] sm:$0xff] }
 0x1cb   : > { %2230 = vmatpush.msrb.mxu2 %v2214_v25 }
 0x1cc   : > { %2198 = vmatpush.msrb.mxu1 %v2170_v9 }
 0x1cd   : > { %2231 = vmatpush.msrb.mxu2 %v2213_v28 }
 0x1ce   : > { %2199 = vmatpush.msrb.mxu1 %v2169_v12 }
 0x1cf   : > { %2232 = vmatpush.msrb.mxu2 %v2212_v29 }
 0x1d0   : > { %2200 = vmatpush.msrb.mxu1 %v2168_v13 }
 0x1d1   : > { %2233 = vmatpush.msrb.mxu2 %v2211_v34 }
 0x1d3   : > { %2234 = vmatpush.msrb.mxu2 %v2210_v38 }
 0x1d5   : > { %2235 = vmatpush.msrb.mxu2 %v2209_v41 }
 0x1e5   : > { %v1891_v40 = vpop.f32.mrf.mxu0  ;;  %v1911_v48 = vpop.f32.mrf.mxu1 }
 0x1e6   : > { %v1914_v60 = vadd.f32 %v1891_v40, %v1795_v36  ;;  %v1915_v1 = vadd.f32 %v1911_v48, %v1796_v52  ;;  %v2208_v36 = vld [vmem:[%s3831_s9 + $0x10] sm:$0xff]  ;;  %v2207_v48 = vld [vmem:[%s3831_s9 + $0x8] sm:$0xff]  ;;  %v2184_v52 = vld [vmem:[%s3830_s8] sm:$0x1] }
 0x1e7   : > { %2236 = vmatpush.msrb.mxu2 %v2208_v36 }
 0x1e8   : > { %2505 = vtanh.f32 %v1914_v60 }
 0x1e9   : > { %2507 = vtanh.f32 %v1915_v1  ;;  %2237 = vmatpush.msrb.mxu2 %v2207_v48 }
 0x1ea   : > { %v1816_v30 = vpop.f32.mrf.mxu2  ;;  %v1836_v24 = vpop.f32.mrf.mxu3 }
 0x1eb   : > { %v1839_v2 = vadd.f32 %v1816_v30, %v1720_v55  ;;  %v1840_v5 = vadd.f32 %v1836_v24, %v1721_v59  ;;  %2238 = vmatpush.msrb.mxu2 %v2206_v37 }
 0x1ee   : > { %v2506_v14 = vpop.eup %2505 }
 0x1ef   : > { %v2508_v44 = vpop.eup %2507 }
 0x20b   : > { %v1935_v7 = vpop.f32.mrf.mxu2  ;;  %v1955_v10 = vpop.f32.mrf.mxu3 }
 0x20c   : > { %v1958_v11 = vadd.f32 %v1935_v7, %v1839_v2  ;;  %v1959_v42 = vadd.f32 %v1955_v10, %v1840_v5 }
 0x20e   : > { %2509 = vtanh.f32 %v1958_v11 }
 0x20f   : > { %2511 = vtanh.f32 %v1959_v42 }
 0x214   : > { %v2510_v45 = vpop.eup %2509 }
 0x215   : > { %v2512_v46 = vpop.eup %2511  ;;  %v1964_v47 = vadd.f32 %v2510_v45, %v2506_v14 }
 0x216   : > { %v1965_v49 = vadd.f32 %v2512_v46, %v2508_v44 }
 0x218   : > { %v1966_v50 = vadd.f32 %v1965_v49, %v1964_v47 }
 0x21a   : > { %v1967_v53 = vmul.f32 0.25, %v1966_v50 }
 0x21c   : > { %2001 = vmatmul.f32.vlgmr.msra.gmra.mxu0 %v1967_v53  ;;  %v2024_v54 = vrot.slane %v1967_v53, 1  ;;  %v2064_v15 = vrot.slane %v1967_v53, 2  ;;  %v2104_v4 = vrot.slane %v1967_v53, 3  ;;  %v2144_v57 = vrot.slane %v1967_v53, 4 }
 0x21e   : > { %2042 = vmatmul.f32.vlgmr.msra.gmra.mxu1 %v2024_v54  ;;  %2082 = vmatmul.f32.vlgmr.msra.gmra.mxu2 %v2064_v15 }
 0x21f   : > { %2122 = vmatmul.f32.vlgmr.msra.gmra.mxu3 %v2104_v4 }
 0x224   : > { %2162 = vmatmul.f32.vlgmr.msrb.gmra.mxu0 %v2144_v57 }
 0x299   : > { %v2002_v51 = vpop.f32.mrf.mxu0 }
 0x29a   : > { %v2005_v26 = vadd.f32 %v2002_v51, %v1968_v16 }
 0x29b   : > { %v2043_v27 = vpop.f32.mrf.mxu1 }
 0x29c   : > { %v2046_v30 = vadd.f32 %v2043_v27, %v2005_v26 }
 0x2a1   : > { %v2083_v24 = vpop.f32.mrf.mxu2  ;;  %v2163_v32 = vpop.f32.mrf.mxu0 }
 0x2a2   : > { %v2086_v35 = vadd.f32 %v2083_v24, %v2046_v30  ;;  %v2123_v39 = vpop.f32.mrf.mxu3 }
 0x2a4   : > { %v2126_v31 = vadd.f32 %v2123_v39, %v2086_v35 }
 0x2a6   : > { %v2166_v33 = vadd.f32 %v2163_v32, %v2126_v31 }
 0x2a8   : > { %2513 = vtanh.f32 %v2166_v33 }
 0x2ae   : > { %v2514_v40 = vpop.eup %2513 }
 0x2af   : > { %2201 = vmatmul.f32.vlgmr.msrb.gmra.mxu1 %v2514_v40 }
 0x32c   : > { %v2202_v55 = vpop.f32.mrf.mxu1 }
 0x32d   : > { %v2203_v59 = vadd.f32 %v2202_v55, %v2184_v52 }
 0x32f   : > { %2515 = vtanh.f32 %v2203_v59 }
 0x335   : > { %v2516_v60 = vpop.eup %2515 }
 0x336   : > { %2239 = vmatmul.f32.vlgmr.msrb.gmra.mxu2 %v2516_v60 }
 0x3b9   : > { %v2240_v1 = vpop.f32.mrf.mxu2 }
 0x3ba   : > { %v2241_v2 = vadd.f32 %v2240_v1, %v2222_v62 }
 0x3bc   : > { %2243 = vst [vmem:[%s412_s22] sm:$0x1] %v2241_v2 }
 0x3bd   : > { %2604 = shalt.err (!%p2601_p8)
}
 0x3be   : > { %2433 = dma.vmem_to_hbm [thread:$0]  (%p2753_p5), %s2256_s3, 16, %s2258_s19, %s2245_s26  }
 0x3bf PF: > { %p2450_p9 = scmp.ge.s32.totalorder %s2647_s20, 2  ;;  %s2269_s15 = sand.u32 1, %s2635_s17  }
 0x3c0   : > { %s2270_s25 = scalar_lea.sflag [#allocation4], %s2269_s15 }
 0x3c1   : > { %p2443_p10 = pnand %p2450_p9, %p2757_p6 }
 0x3c3   : > { %p2444_p11 = pneg %p2443_p10 }
 0x3c5   : > { %2630 = dma.done.wait (%p2444_p11), %s2270_s25, 16  }
 0x3c6   : > { %2632 = vsyncadd (%p2444_p11), %s2270_s25, 4294967280  ;;  %s3842_s12 = sld [smem:[#allocation11_spill]]  ;;  %p23_p12 = scmp.ge.s32.totalorder %s2740_s23, 4  }
 0x3c7   : > { %s3843_s19 = sld [smem:[#allocation12_spill]]  ;;  %s3844_s17 = smov %s2639_s18 }
 0x3c8   : > { %s3846_s20 = smov %s2740_s23  ;;  %25 = sbr.rel (!%p23_p12) target bundleno = 7 (0x7), region = 123 }
 0x3cc   : > { %s3845_s18 = smov %s3842_s12 }
 0x3cd   :  { %2275 = vsyncpa [#allocation3], 1 }
 0x3ce   :  { %2277 = vsyncpa [#allocation3 + $0x1], 1 }
 0x3cf   :  { %2278 = vsyncpa [#allocation6], 1 }
 0x3d0   :  { %2279 = vsyncpa [#allocation4], 1 }
 0x3d1   :  { %2281 = vsyncpa [#allocation4 + $0x1], 1 }

</bundles_post_ra>
